<compile_context>
chip_gen: v7x
topology: tpu7x:2x2x1
jax: 0.10.0
libtpu: 0.0.40
codegen_flags: <defaults>
</compile_context>

<pallas_src>
import functools

import jax
import jax.numpy as jnp
from jax.experimental import pallas as pl
from jax.experimental.pallas import tpu as pltpu

LATENT_DIM = 64


# ---------------------------------------------------------------------------
# Fused decoder kernel: one batch tile of `tb` images per grid step.
# ---------------------------------------------------------------------------
def _decoder_kernel(x_ref, fw_ref, fb_ref, w2_ref, b2_ref, w3_ref, b3_ref,
                    o_ref, *, tb):
    f32 = jnp.float32
    bf16 = jnp.bfloat16

    # ---- Linear(64 -> 2048) fused with UpConv1 (exact: no activation in
    # between).  Columns of fw are ordered (pixel p, ki1, kj1, oc1). ----
    x = x_ref[...].astype(bf16)                                    # (tb, 64)
    h1 = jnp.dot(x, fw_ref[...], preferred_element_type=f32)       # (tb, 4096)
    h1 = jnp.maximum(h1 + fb_ref[...], 0.0)
    # Repack to the pixel-row matrix (16*tb, 256): row = p*tb + b.  Each slice
    # is a lane-aligned (tb, 256) strip -> pure vreg stacking, no HBM traffic.
    h1 = jnp.concatenate(
        [h1[:, p * 256:(p + 1) * 256] for p in range(16)], axis=0).astype(bf16)

    # ---- UpConv2: ConvTranspose2d(64, 32, k=2, s=2) + ReLU ----
    # Block-diagonal over the 4 upconv1 sub-pixels; cols (q, ki2, kj2, oc2).
    h2 = jnp.dot(h1, w2_ref[...], preferred_element_type=f32)      # (m, 512)
    h2 = jnp.maximum(h2 + b2_ref[...], 0.0).astype(bf16)

    # ---- UpConv3: ConvTranspose2d(32, 3, k=2, s=2) + ReLU ----
    # Block-diagonal over all 16 sub-pixel positions; cols
    # (q, r, ki3, kj3, c) = 192 useful, zero-padded to 256 lanes.
    h3 = jnp.dot(h2, w3_ref[...], preferred_element_type=f32)      # (m, 256)
    o_ref[...] = jnp.maximum(h3 + b3_ref[...], 0.0).astype(o_ref.dtype)


# ---------------------------------------------------------------------------
# One-time weight packing (done outside the forward; no per-call transposes).
# ---------------------------------------------------------------------------
def pack_params(params):
    bf16 = jnp.bfloat16
    f32 = jnp.float32

    def pack_upconv_w(w):
        # (Cin, Cout, 2, 2) -> (Cin, 4*Cout); column order (ki, kj, oc).
        cin, cout = w.shape[0], w.shape[1]
        return jnp.transpose(w, (0, 2, 3, 1)).reshape(cin, 4 * cout)

    w1m = pack_upconv_w(params["w1"])                 # (128, 256)
    b1t = jnp.tile(params["b1"], 4)                   # (256,)
    w2m = pack_upconv_w(params["w2"])                 # (64, 128)
    b2t = jnp.tile(params["b2"], 4)                   # (128,)
    w3m = pack_upconv_w(params["w3"])                 # (32, 12)
    b3t = jnp.tile(params["b3"], 4)                   # (12,)

    # --- fuse Linear into UpConv1 ---
    # torch column of the linear output is c*16 + p (p = i1*4 + j1).
    lw = params["lin_w"].reshape(LATENT_DIM, 128, 16)  # (K, c, p)
    lb = params["lin_b"].reshape(128, 16)              # (c, p)
    fw = jnp.einsum("kcp,cn->kpn", lw, w1m).reshape(LATENT_DIM, 16 * 256)
    fb = (jnp.einsum("cp,cn->pn", lb, w1m) + b1t[None, :]).reshape(1, 16 * 256)

    # --- block-diagonal UpConv2: rows q*64 + oc1 -> cols q*128 + (ki2,kj2,oc2)
    w2bd = jnp.zeros((256, 512), f32)
    for q in range(4):
        w2bd = w2bd.at[q * 64:(q + 1) * 64, q * 128:(q + 1) * 128].set(w2m)
    b2bd = jnp.tile(b2t, 4).reshape(1, 512)

    # --- block-diagonal UpConv3: rows s*32 + oc2 -> cols s*12 + (ki3,kj3,c),
    #     s = q*4 + r; 192 useful columns zero-padded to 256.
    w3bd = jnp.zeros((512, 256), f32)
    for s in range(16):
        w3bd = w3bd.at[s * 32:(s + 1) * 32, s * 12:(s + 1) * 12].set(w3m)
    b3bd = jnp.zeros((1, 256), f32).at[0, :192].set(jnp.tile(b3t, 16))

    return {
        "fw": fw.astype(bf16), "fb": fb.astype(f32),
        "w2": w2bd.astype(bf16), "b2": b2bd.astype(f32),
        "w3": w3bd.astype(bf16), "b3": b3bd.astype(f32),
    }


# ---------------------------------------------------------------------------
# Full decoder forward: pad batch, one fused pallas_call, one final permute.
# ---------------------------------------------------------------------------
def conv_decoder_forward(x, packed, *, tb=8):
    B = x.shape[0]
    nb = pl.cdiv(B, tb)
    bp = nb * tb
    if bp != B:
        x = jnp.pad(x, ((0, bp - B), (0, 0)))
    m = 16 * tb                                  # pixel rows per batch tile

    flops = nb * 2 * m * (LATENT_DIM * 256 + 256 * 512 + 512 * 256)
    w_bytes = sum(int(v.size) * v.dtype.itemsize for v in packed.values())
    bytes_accessed = int(x.size) * x.dtype.itemsize + w_bytes + nb * m * 256 * 4

    out = pl.pallas_call(
        functools.partial(_decoder_kernel, tb=tb),
        out_shape=jax.ShapeDtypeStruct((nb * m, 256), jnp.float32),
        grid_spec=pltpu.PrefetchScalarGridSpec(
            num_scalar_prefetch=0,
            grid=(nb,),
            in_specs=[
                pl.BlockSpec((tb, LATENT_DIM), lambda i: (i, 0)),       # x tile
                pl.BlockSpec((LATENT_DIM, 4096), lambda i: (0, 0)),     # fused W
                pl.BlockSpec((1, 4096), lambda i: (0, 0)),              # fused b
                pl.BlockSpec((256, 512), lambda i: (0, 0)),             # w2 bd
                pl.BlockSpec((1, 512), lambda i: (0, 0)),               # b2
                pl.BlockSpec((512, 256), lambda i: (0, 0)),             # w3 bd
                pl.BlockSpec((1, 256), lambda i: (0, 0)),               # b3
            ],
            out_specs=pl.BlockSpec((m, 256), lambda i: (i, 0)),
        ),
        compiler_params=pltpu.CompilerParams(
            dimension_semantics=("parallel",)),
        cost_estimate=pl.CostEstimate(
            flops=flops, transcendentals=0, bytes_accessed=bytes_accessed),
    )(x, packed["fw"], packed["fb"], packed["w2"], packed["b2"],
      packed["w3"], packed["b3"])

    # Undo the interleaved layout with ONE small permutation on the output.
    # Rows: (tile, i1, j1, b); columns: (ki1, kj1, ki2, kj2, ki3, kj3, c) + pad.
    y = out.reshape(nb, 4, 4, tb, 256)[..., :192]
    y = y.reshape(nb, 4, 4, tb, 2, 2, 2, 2, 2, 2, 3)
    # -> (tile, b, c, i1, ki1, ki2, ki3, j1, kj1, kj2, kj3)
    y = jnp.transpose(y, (0, 3, 10, 1, 4, 6, 8, 2, 5, 7, 9))
    return y.reshape(nb * tb, 3, 32, 32)[:B]


# ---------------------------------------------------------------------------
# Pure-JAX f32 reference (for a numerical sanity check).
# ---------------------------------------------------------------------------
def conv_decoder_reference(x, params):
    h = x @ params["lin_w"] + params["lin_b"]                 # (B, 2048)
    h = h.reshape(x.shape[0], 128, 4, 4)                      # NCHW
    for wk, bk in (("w1", "b1"), ("w2", "b2"), ("w3", "b3")):
        w, b = params[wk], params[bk]                         # (Cin,Cout,2,2)
        y = jnp.einsum("ncij,cokl->noikjl", h, w)
        n, o, hh, _, ww, _ = y.shape
        y = y.reshape(n, o, hh * 2, ww * 2) + b[None, :, None, None]
        h = jnp.maximum(y, 0.0)
    return h


def init_params(key):
    ks = jax.random.split(key, 8)

    def rnd(k, shape, scale=0.05):
        return (scale * jax.random.normal(k, shape)).astype(jnp.float32)

    return {
        # nn.Linear(64, 2048): stored as (64, 2048) so y = x @ lin_w + lin_b
        "lin_w": rnd(ks[0], (LATENT_DIM, 128 * 4 * 4)),
        "lin_b": rnd(ks[1], (128 * 4 * 4,)),
        # ConvTranspose2d weights in PyTorch layout (Cin, Cout, 2, 2)
        "w1": rnd(ks[2], (128, 64, 2, 2)),
        "b1": rnd(ks[3], (64,)),
        "w2": rnd(ks[4], (64, 32, 2, 2)),
        "b2": rnd(ks[5], (32,)),
        "w3": rnd(ks[6], (32, 3, 2, 2)),
        "b3": rnd(ks[7], (3,)),
    }


if __name__ == "__main__":
    key = jax.random.PRNGKey(0)
    pkey, xkey = jax.random.split(key)
    params = init_params(pkey)
    packed = pack_params(params)

    batch = 2
    x = jax.random.normal(xkey, (batch, LATENT_DIM), dtype=jnp.float32)

    fwd = jax.jit(conv_decoder_forward)
    out = jax.block_until_ready(fwd(x, packed))

    assert out.shape == (batch, 3, 32, 32), out.shape
    assert out.dtype == jnp.float32

    # Sanity check vs. f32 reference (kernel uses bf16 matmul inputs with f32
    # accumulation, hence the loose tolerance).
    ref = conv_decoder_reference(x, params)
    err = float(jnp.max(jnp.abs(out - ref)))
    assert err < 5e-2, f"max abs error {err}"

    print("KERNEL_OK")
</pallas_src>

<mosaic_0001>
module attributes {stable_mosaic.version = 11 : i64} {
  func.func @_decoder_kernel(%arg0: i32, %arg1: memref<8x64xf32, #tpu.memory_space<vmem>>, %arg2: memref<64x4096xbf16, #tpu.memory_space<vmem>>, %arg3: memref<1x4096xf32, #tpu.memory_space<vmem>>, %arg4: memref<256x512xbf16, #tpu.memory_space<vmem>>, %arg5: memref<1x512xf32, #tpu.memory_space<vmem>>, %arg6: memref<512x256xbf16, #tpu.memory_space<vmem>>, %arg7: memref<1x256xf32, #tpu.memory_space<vmem>>, %arg8: memref<128x256xf32, #tpu.memory_space<vmem>>) attributes {dimension_semantics = [#tpu.dimension_semantics<parallel>], iteration_bounds = array<i64: 1>, scalar_prefetch = 0 : i64, scratch_operands = 0 : i64, tpu.core_type = #tpu.core_type<tc>, window_params = [{transform_indices = @transform_0, window_bounds = array<i64: 8, 64>}, {pipeline_mode = #tpu.pipeline_mode<synchronous>, transform_indices = @transform_1, window_bounds = array<i64: 64, 4096>}, {pipeline_mode = #tpu.pipeline_mode<synchronous>, transform_indices = @transform_2, window_bounds = array<i64: 1, 4096>}, {pipeline_mode = #tpu.pipeline_mode<synchronous>, transform_indices = @transform_3, window_bounds = array<i64: 256, 512>}, {pipeline_mode = #tpu.pipeline_mode<synchronous>, transform_indices = @transform_4, window_bounds = array<i64: 1, 512>}, {pipeline_mode = #tpu.pipeline_mode<synchronous>, transform_indices = @transform_5, window_bounds = array<i64: 512, 256>}, {pipeline_mode = #tpu.pipeline_mode<synchronous>, transform_indices = @transform_6, window_bounds = array<i64: 1, 256>}, {transform_indices = @transform_7, window_bounds = array<i64: 128, 256>}]} {
    %c0 = arith.constant 0 : index
    %c0_0 = arith.constant 0 : index
    %0 = vector.load %arg1[%c0, %c0_0] : memref<8x64xf32, #tpu.memory_space<vmem>>, vector<8x64xf32>
    %1 = arith.truncf %0 : vector<8x64xf32> to vector<8x64xbf16>
    %c0_1 = arith.constant 0 : index
    %c0_2 = arith.constant 0 : index
    %2 = vector.load %arg2[%c0_1, %c0_2] : memref<64x4096xbf16, #tpu.memory_space<vmem>>, vector<64x4096xbf16>
    %cst = arith.constant dense<0.000000e+00> : vector<8x4096xf32>
    %3 = tpu.matmul %1, %2, %cst {dimension_numbers = #tpu.dot_dimension_numbers<[1], [0], [0], [1], [0, 0, 1, 1], [], []>} : vector<8x64xbf16>, vector<64x4096xbf16>, vector<8x4096xf32> -> vector<8x4096xf32>
    %c0_3 = arith.constant 0 : index
    %c0_4 = arith.constant 0 : index
    %4 = vector.load %arg3[%c0_3, %c0_4] : memref<1x4096xf32, #tpu.memory_space<vmem>>, vector<1x4096xf32>
    %5 = vector.broadcast %4 : vector<1x4096xf32> to vector<8x4096xf32>
    %6 = arith.addf %3, %5 : vector<8x4096xf32>
    %cst_5 = arith.constant 0.000000e+00 : f32
    %7 = vector.broadcast %cst_5 : f32 to vector<8x4096xf32>
    %8 = arith.maximumf %6, %7 : vector<8x4096xf32>
    %9 = vector.extract_strided_slice %8 {offsets = [0, 0], sizes = [8, 256], strides = [1, 1]} : vector<8x4096xf32> to vector<8x256xf32>
    %10 = vector.extract_strided_slice %8 {offsets = [0, 256], sizes = [8, 256], strides = [1, 1]} : vector<8x4096xf32> to vector<8x256xf32>
    %11 = vector.extract_strided_slice %8 {offsets = [0, 512], sizes = [8, 256], strides = [1, 1]} : vector<8x4096xf32> to vector<8x256xf32>
    %12 = vector.extract_strided_slice %8 {offsets = [0, 768], sizes = [8, 256], strides = [1, 1]} : vector<8x4096xf32> to vector<8x256xf32>
    %13 = vector.extract_strided_slice %8 {offsets = [0, 1024], sizes = [8, 256], strides = [1, 1]} : vector<8x4096xf32> to vector<8x256xf32>
    %14 = vector.extract_strided_slice %8 {offsets = [0, 1280], sizes = [8, 256], strides = [1, 1]} : vector<8x4096xf32> to vector<8x256xf32>
    %15 = vector.extract_strided_slice %8 {offsets = [0, 1536], sizes = [8, 256], strides = [1, 1]} : vector<8x4096xf32> to vector<8x256xf32>
    %16 = vector.extract_strided_slice %8 {offsets = [0, 1792], sizes = [8, 256], strides = [1, 1]} : vector<8x4096xf32> to vector<8x256xf32>
    %17 = vector.extract_strided_slice %8 {offsets = [0, 2048], sizes = [8, 256], strides = [1, 1]} : vector<8x4096xf32> to vector<8x256xf32>
    %18 = vector.extract_strided_slice %8 {offsets = [0, 2304], sizes = [8, 256], strides = [1, 1]} : vector<8x4096xf32> to vector<8x256xf32>
    %19 = vector.extract_strided_slice %8 {offsets = [0, 2560], sizes = [8, 256], strides = [1, 1]} : vector<8x4096xf32> to vector<8x256xf32>
    %20 = vector.extract_strided_slice %8 {offsets = [0, 2816], sizes = [8, 256], strides = [1, 1]} : vector<8x4096xf32> to vector<8x256xf32>
    %21 = vector.extract_strided_slice %8 {offsets = [0, 3072], sizes = [8, 256], strides = [1, 1]} : vector<8x4096xf32> to vector<8x256xf32>
    %22 = vector.extract_strided_slice %8 {offsets = [0, 3328], sizes = [8, 256], strides = [1, 1]} : vector<8x4096xf32> to vector<8x256xf32>
    %23 = vector.extract_strided_slice %8 {offsets = [0, 3584], sizes = [8, 256], strides = [1, 1]} : vector<8x4096xf32> to vector<8x256xf32>
    %24 = vector.extract_strided_slice %8 {offsets = [0, 3840], sizes = [8, 256], strides = [1, 1]} : vector<8x4096xf32> to vector<8x256xf32>
    %25 = tpu.concatenate %9, %10, %11, %12, %13, %14, %15, %16, %17, %18, %19, %20, %21, %22, %23, %24 in 0 : vector<8x256xf32>, vector<8x256xf32>, vector<8x256xf32>, vector<8x256xf32>, vector<8x256xf32>, vector<8x256xf32>, vector<8x256xf32>, vector<8x256xf32>, vector<8x256xf32>, vector<8x256xf32>, vector<8x256xf32>, vector<8x256xf32>, vector<8x256xf32>, vector<8x256xf32>, vector<8x256xf32>, vector<8x256xf32> -> vector<128x256xf32>
    %26 = arith.truncf %25 : vector<128x256xf32> to vector<128x256xbf16>
    %c0_6 = arith.constant 0 : index
    %c0_7 = arith.constant 0 : index
    %27 = vector.load %arg4[%c0_6, %c0_7] : memref<256x512xbf16, #tpu.memory_space<vmem>>, vector<256x512xbf16>
    %cst_8 = arith.constant dense<0.000000e+00> : vector<128x512xf32>
    %28 = tpu.matmul %26, %27, %cst_8 {dimension_numbers = #tpu.dot_dimension_numbers<[1], [0], [0], [1], [0, 0, 1, 1], [], []>} : vector<128x256xbf16>, vector<256x512xbf16>, vector<128x512xf32> -> vector<128x512xf32>
    %c0_9 = arith.constant 0 : index
    %c0_10 = arith.constant 0 : index
    %29 = vector.load %arg5[%c0_9, %c0_10] : memref<1x512xf32, #tpu.memory_space<vmem>>, vector<1x512xf32>
    %30 = vector.broadcast %29 : vector<1x512xf32> to vector<128x512xf32>
    %31 = arith.addf %28, %30 : vector<128x512xf32>
    %cst_11 = arith.constant 0.000000e+00 : f32
    %32 = vector.broadcast %cst_11 : f32 to vector<128x512xf32>
    %33 = arith.maximumf %31, %32 : vector<128x512xf32>
    %34 = arith.truncf %33 : vector<128x512xf32> to vector<128x512xbf16>
    %c0_12 = arith.constant 0 : index
    %c0_13 = arith.constant 0 : index
    %35 = vector.load %arg6[%c0_12, %c0_13] : memref<512x256xbf16, #tpu.memory_space<vmem>>, vector<512x256xbf16>
    %cst_14 = arith.constant dense<0.000000e+00> : vector<128x256xf32>
    %36 = tpu.matmul %34, %35, %cst_14 {dimension_numbers = #tpu.dot_dimension_numbers<[1], [0], [0], [1], [0, 0, 1, 1], [], []>} : vector<128x512xbf16>, vector<512x256xbf16>, vector<128x256xf32> -> vector<128x256xf32>
    %c0_15 = arith.constant 0 : index
    %c0_16 = arith.constant 0 : index
    %37 = vector.load %arg7[%c0_15, %c0_16] : memref<1x256xf32, #tpu.memory_space<vmem>>, vector<1x256xf32>
    %38 = vector.broadcast %37 : vector<1x256xf32> to vector<128x256xf32>
    %39 = arith.addf %36, %38 : vector<128x256xf32>
    %cst_17 = arith.constant 0.000000e+00 : f32
    %40 = vector.broadcast %cst_17 : f32 to vector<128x256xf32>
    %41 = arith.maximumf %39, %40 : vector<128x256xf32>
    %c0_18 = arith.constant 0 : index
    %c0_19 = arith.constant 0 : index
    %42 = vector.load %arg8[%c0_18, %c0_19] : memref<128x256xf32, #tpu.memory_space<vmem>>, vector<128x256xf32>
    tpu.vector_store %arg8[%c0_18, %c0_19], %41 {strides = array<i32>} : memref<128x256xf32, #tpu.memory_space<vmem>>, vector<128x256xf32>,
    return
  }
  func.func @transform_0(%arg0: i32) -> (i32, i32) {
    %c0_i32 = arith.constant 0 : i32
    %c0_i32_0 = arith.constant 0 : i32
    return %arg0, %c0_i32 : i32, i32
  }
  func.func @transform_1(%arg0: i32) -> (i32, i32) {
    %c0_i32 = arith.constant 0 : i32
    %c0_i32_0 = arith.constant 0 : i32
    %c0_i32_1 = arith.constant 0 : i32
    return %c0_i32, %c0_i32_0 : i32, i32
  }
  func.func @transform_2(%arg0: i32) -> (i32, i32) {
    %c0_i32 = arith.constant 0 : i32
    %c0_i32_0 = arith.constant 0 : i32
    %c0_i32_1 = arith.constant 0 : i32
    return %c0_i32, %c0_i32_0 : i32, i32
  }
  func.func @transform_3(%arg0: i32) -> (i32, i32) {
    %c0_i32 = arith.constant 0 : i32
    %c0_i32_0 = arith.constant 0 : i32
    %c0_i32_1 = arith.constant 0 : i32
    return %c0_i32, %c0_i32_0 : i32, i32
  }
  func.func @transform_4(%arg0: i32) -> (i32, i32) {
    %c0_i32 = arith.constant 0 : i32
    %c0_i32_0 = arith.constant 0 : i32
    %c0_i32_1 = arith.constant 0 : i32
    return %c0_i32, %c0_i32_0 : i32, i32
  }
  func.func @transform_5(%arg0: i32) -> (i32, i32) {
    %c0_i32 = arith.constant 0 : i32
    %c0_i32_0 = arith.constant 0 : i32
    %c0_i32_1 = arith.constant 0 : i32
    return %c0_i32, %c0_i32_0 : i32, i32
  }
  func.func @transform_6(%arg0: i32) -> (i32, i32) {
    %c0_i32 = arith.constant 0 : i32
    %c0_i32_0 = arith.constant 0 : i32
    %c0_i32_1 = arith.constant 0 : i32
    return %c0_i32, %c0_i32_0 : i32, i32
  }
  func.func @transform_7(%arg0: i32) -> (i32, i32) {
    %c0_i32 = arith.constant 0 : i32
    %c0_i32_0 = arith.constant 0 : i32
    return %arg0, %c0_i32 : i32, i32
  }
}

</mosaic_0001>

<bundles_post_ra>
// kernel: conv_decoder_forward.1
= control target key start
LH: loop header
LB: loop body
LE: loop exit
PB: predicated region body
PF: predicated region fallthrough
CT: control target
= control target key end

     0   :  { %12 = vsyncpa [#allocation3], 0  ;;  %s4363_s0 = inlined_call_operand.vmem [shape: f32[8,64], index: 0, kind: input, shape index: {}]   ;;  %s4364_s1 = inlined_call_operand.hbm [shape: bf16[64,4096], index: 1, kind: input, shape index: {}]   ;;  %s4365_s2 = inlined_call_operand.hbm [shape: f32[1,4096], index: 2, kind: input, shape index: {}]   ;;  %s4366_s3 = inlined_call_operand.hbm [shape: bf16[256,512], index: 3, kind: input, shape index: {}]   ;;  %s4367_s4 = inlined_call_operand.hbm [shape: f32[1,512], index: 4, kind: input, shape index: {}]   ;;  %s4368_s5 = inlined_call_operand.hbm [shape: bf16[512,256], index: 5, kind: input, shape index: {}]   ;;  %s4369_s6 = inlined_call_operand.hbm [shape: f32[1,256], index: 6, kind: input, shape index: {}]   ;;  %s4370_s7 = inlined_call_operand.vmem [shape: f32[128,256], index: 7, kind: output, shape index: {}]  }
   0x1   :  { %13 = vsyncpa [#allocation5], 0 }
   0x2   :  { %14 = vsyncpa [#allocation8], 0 }
   0x3   :  { %15 = vsyncpa [#allocation11], 0  ;;  %s3851_s24 = smov [#allocation4]   ;;  %s3852_s26 = smov [#allocation7]  }
   0x4   :  { %s36_s25 = sshll.u32 %s3851_s24, 4  ;;  %s58_s27 = sshll.u32 %s3852_s26, 4  ;;  %s37_s25 = int_to_ptr.vmem [resolvable:$true] %s36_s25  ;;  %s59_s27 = int_to_ptr.vmem [resolvable:$true] %s58_s27 }
   0x5   :  { %s3711_s30 = scalar_lea.hbm %s4365_s2, 512 }
   0x6   :  { %p3712_p0 = scmp.ne.s32.totalorder %s4365_s2, %s3711_s30  ;;  %p3715_p1 = scmp.lt.u32.totalorder %s3711_s30, %s4365_s2 }
   0x8   :  { %p3717_p2 = pnand %p3715_p1, %p3712_p0 }
   0xa   :  { %3720 = shalt.err (!%p3717_p2)
}
   0xb   :  { %s3721_s12 = scalar_lea.vmem %s37_s25, 512  ;;  %p3726_p4 = scmp.lt.s32.totalorder %s37_s25, %s37_s25 }
   0xc   :  { %p3722_p3 = scmp.ne.s32.totalorder %s37_s25, %s3721_s12  ;;  %p3727_p5 = scmp.lt.s32.totalorder %s3721_s12, %s3721_s12 }
   0xe   :  { %p3728_p6 = por %p3727_p5, %p3726_p4 }
  0x10   :  { %p3729_p7 = pnand %p3728_p6, %p3722_p3 }
  0x12   :  { %3732 = shalt.err (!%p3729_p7)
}
  0x13   :  { %39 = dma.hbm_to_vmem [thread:$0]  %s4365_s2, 512, %s37_s25, [#allocation5]  }
  0x14   :  { %s3733_s17 = scalar_lea.hbm %s4367_s4, 64 }
  0x15   :  { %p3734_p8 = scmp.ne.s32.totalorder %s4367_s4, %s3733_s17  ;;  %p3737_p9 = scmp.lt.u32.totalorder %s3733_s17, %s4367_s4 }
  0x17   :  { %p3739_p10 = pnand %p3737_p9, %p3734_p8 }
  0x19   :  { %3742 = shalt.err (!%p3739_p10)
}
  0x1a   :  { %s3743_s22 = scalar_lea.vmem %s59_s27, 64  ;;  %p3748_p12 = scmp.lt.s32.totalorder %s59_s27, %s59_s27 }
  0x1b   :  { %p3744_p11 = scmp.ne.s32.totalorder %s59_s27, %s3743_s22  ;;  %p3749_p13 = scmp.lt.s32.totalorder %s3743_s22, %s3743_s22 }
  0x1d   :  { %p3750_p0 = por %p3749_p13, %p3748_p12 }
  0x1f   :  { %p3751_p1 = pnand %p3750_p0, %p3744_p11 }
  0x21   :  { %3754 = shalt.err (!%p3751_p1)
}
  0x22   :  { %61 = dma.hbm_to_vmem [thread:$0]  %s4367_s4, 64, %s59_s27, [#allocation8]  }
  0x23   :  { %s3853_s24 = smov [#allocation2]   ;;  %s3755_s29 = scalar_lea.hbm %s4364_s1, 16384 }
  0x24   :  { %s23_s25 = sshll.u32 %s3853_s24, 4  ;;  %p3756_p2 = scmp.ne.s32.totalorder %s4364_s1, %s3755_s29  ;;  %s24_s25 = int_to_ptr.vmem [resolvable:$true] %s23_s25 }
  0x25   :  { %p3759_p3 = scmp.lt.u32.totalorder %s3755_s29, %s4364_s1 }
  0x27   :  { %p3761_p4 = pnand %p3759_p3, %p3756_p2 }
  0x29   :  { %3764 = shalt.err (!%p3761_p4)
}
  0x2a   :  { %s3765_s11 = scalar_lea.vmem %s24_s25, 16384  ;;  %p3770_p6 = scmp.lt.s32.totalorder %s24_s25, %s24_s25 }
  0x2b   :  { %p3766_p5 = scmp.ne.s32.totalorder %s24_s25, %s3765_s11  ;;  %p3771_p7 = scmp.lt.s32.totalorder %s3765_s11, %s3765_s11 }
  0x2d   :  { %p3772_p8 = por %p3771_p7, %p3770_p6 }
  0x2f   :  { %p3773_p9 = pnand %p3772_p8, %p3766_p5 }
  0x31   :  { %3776 = shalt.err (!%p3773_p9)
}
  0x32   :  { %s3854_s4 = smov 2048   ;;  %s3855_s27 = smov 128  }
  0x33   :  { %29 = dma.hbm_to_vmem [thread:$0]  %s4364_s1, 16384, %s24_s25, [#allocation3], %s3854_s4, %s3854_s4, %s3855_s27  }
  0x34   :  { %s3856_s14 = smov [#allocation6]   ;;  %s3777_s18 = scalar_lea.hbm %s4366_s3, 8192 }
  0x35   :  { %s45_s15 = sshll.u32 %s3856_s14, 4  ;;  %p3778_p10 = scmp.ne.s32.totalorder %s4366_s3, %s3777_s18  ;;  %s46_s15 = int_to_ptr.vmem [resolvable:$true] %s45_s15 }
  0x36   :  { %p3781_p11 = scmp.lt.u32.totalorder %s3777_s18, %s4366_s3 }
  0x38   :  { %p3783_p12 = pnand %p3781_p11, %p3778_p10 }
  0x3a   :  { %3786 = shalt.err (!%p3783_p12)
}
  0x3b   :  { %s3787_s2 = scalar_lea.vmem %s46_s15, 8192  ;;  %p3792_p0 = scmp.lt.s32.totalorder %s46_s15, %s46_s15 }
  0x3c   :  { %p3788_p13 = scmp.ne.s32.totalorder %s46_s15, %s3787_s2  ;;  %p3793_p1 = scmp.lt.s32.totalorder %s3787_s2, %s3787_s2 }
  0x3e   :  { %p3794_p2 = por %p3793_p1, %p3792_p0 }
  0x40   :  { %p3795_p3 = pnand %p3794_p2, %p3788_p13 }
  0x42   :  { %3798 = shalt.err (!%p3795_p3)
}
  0x43   :  { %s3857_s1 = smov 256   ;;  %s3858_s23 = smov 16  }
  0x44   :  { %51 = dma.hbm_to_vmem [thread:$0]  %s4366_s3, 8192, %s46_s15, [#allocation5], %s3857_s1, %s3857_s1, %s3858_s23  }
  0x45   :  { %s3859_s26 = smov [#allocation9]   ;;  %s3860_s29 = smov [#allocation10]  }
  0x46   :  { %s67_s28 = sshll.u32 %s3859_s26, 4  ;;  %s80_s30 = sshll.u32 %s3860_s29, 4  ;;  %s68_s28 = int_to_ptr.vmem [resolvable:$true] %s67_s28  ;;  %s81_s30 = int_to_ptr.vmem [resolvable:$true] %s80_s30 }
  0x47   :  { %s3799_s10 = scalar_lea.hbm %s4368_s5, 8192 }
  0x48   :  { %p3800_p4 = scmp.ne.s32.totalorder %s4368_s5, %s3799_s10  ;;  %p3803_p5 = scmp.lt.u32.totalorder %s3799_s10, %s4368_s5 }
  0x4a   :  { %p3805_p6 = pnand %p3803_p5, %p3800_p4 }
  0x4c   :  { %3808 = shalt.err (!%p3805_p6)
}
  0x4d   :  { %s3809_s3 = scalar_lea.vmem %s68_s28, 8192  ;;  %p3814_p8 = scmp.lt.s32.totalorder %s68_s28, %s68_s28 }
  0x4e   :  { %p3810_p7 = scmp.ne.s32.totalorder %s68_s28, %s3809_s3  ;;  %p3815_p9 = scmp.lt.s32.totalorder %s3809_s3, %s3809_s3 }
  0x50   :  { %p3816_p10 = por %p3815_p9, %p3814_p8 }
  0x52   :  { %p3817_p11 = pnand %p3816_p10, %p3810_p7 }
  0x54   :  { %3820 = shalt.err (!%p3817_p11)
}
  0x55   :  { %s3861_s14 = smov 8   ;;  %s3821_s19 = scalar_lea.hbm %s4369_s6, 32 }
  0x56   :  { %73 = dma.hbm_to_vmem [thread:$0]  %s4368_s5, 8192, %s68_s28, [#allocation8], %s3855_s27, %s3855_s27, %s3861_s14  }
  0x57   :  { %p3822_p12 = scmp.ne.s32.totalorder %s4369_s6, %s3821_s19  ;;  %p3825_p13 = scmp.lt.u32.totalorder %s3821_s19, %s4369_s6 }
  0x59   :  { %p3827_p0 = pnand %p3825_p13, %p3822_p12 }
  0x5b   :  { %3830 = shalt.err (!%p3827_p0)
}
  0x5c   :  { %s3831_s1 = scalar_lea.vmem %s81_s30, 32  ;;  %p3836_p2 = scmp.lt.s32.totalorder %s81_s30, %s81_s30 }
  0x5d   :  { %p3832_p1 = scmp.ne.s32.totalorder %s81_s30, %s3831_s1  ;;  %p3837_p3 = scmp.lt.s32.totalorder %s3831_s1, %s3831_s1 }
  0x5f   :  { %p3838_p4 = por %p3837_p3, %p3836_p2 }
  0x61   :  { %p3839_p5 = pnand %p3838_p4, %p3832_p1 }
  0x63   :  { %3842 = shalt.err (!%p3839_p5)
}
  0x64   :  { %83 = dma.hbm_to_vmem [thread:$0]  %s4369_s6, 32, %s81_s30, [#allocation11]  }
  0x65   :  { %3843 = dma.done.wait [#allocation3], 16384  }
  0x66   :  { %3844 = vsyncadd [#allocation3], 4294950912 }
  0x67   :  { %3845 = dma.done.wait [#allocation5], 8704  }
  0x68   :  { %3846 = vsyncadd [#allocation5], 4294958592 }
  0x69   :  { %3847 = dma.done.wait [#allocation8], 8256  }
  0x6a   :  { %3848 = vsyncadd [#allocation8], 4294959040 }
  0x6b   :  { %3849 = dma.done.wait [#allocation11], 32  }
  0x6c   :  { %3850 = vsyncadd [#allocation11], 4294967264  ;;  %v3862_v0 = vmov 0   ;;  %v105_v1 = vld [vmem:[#allocation2] sm:$0xff]  ;;  %v106_v3 = vld [vmem:[#allocation2 + $0x8] sm:$0xff]  ;;  %vm1041_vm0 = vcmask 523264  }
  0x6d   :  { %1077 = vmatprep.mubr.bf16.mxu0 %v3862_v0  ;;  %1118 = vmatprep.mubr.bf16.mxu1 %v3862_v0  ;;  %v121_v2 = vld [vmem:[#allocation2 + $0x80] sm:$0xff]  ;;  %v122_v5 = vld [vmem:[#allocation2 + $0x88] sm:$0xff]  ;;  %v107_v31 = vld [vmem:[#allocation2 + $0x10] sm:$0xff] }
  0x6e   :  { %v3172_v4 = vcombine.high %v105_v1, %v121_v2  ;;  %v3171_v6 = vcombine.low %v105_v1, %v121_v2  ;;  %v137_v7 = vld [vmem:[#allocation2 + $0x100] sm:$0xff]  ;;  %v3174_v9 = vcombine.high %v106_v3, %v122_v5  ;;  %v3173_v10 = vcombine.low %v106_v3, %v122_v5  ;;  %v138_v12 = vld [vmem:[#allocation2 + $0x108] sm:$0xff]  ;;  %v123_v32 = vld [vmem:[#allocation2 + $0x90] sm:$0xff] }
  0x6f   :  { %v153_v8 = vld [vmem:[#allocation2 + $0x180] sm:$0xff]  ;;  %v154_v13 = vld [vmem:[#allocation2 + $0x188] sm:$0xff]  ;;  %v108_v33 = vld [vmem:[#allocation2 + $0x18] sm:$0xff]  ;;  %v3176_v38 = vcombine.high %v107_v31, %v123_v32  ;;  %v3175_v45 = vcombine.low %v107_v31, %v123_v32 }
  0x70   :  { %v3204_v11 = vcombine.high %v137_v7, %v153_v8  ;;  %v169_v14 = vld [vmem:[#allocation2 + $0x200] sm:$0xff]  ;;  %1045 = vmatprep.subr.bf16.mxu0 %v3172_v4  ;;  %v3206_v15 = vcombine.high %v138_v12, %v154_v13  ;;  %v170_v17 = vld [vmem:[#allocation2 + $0x208] sm:$0xff]  ;;  %1086 = vmatprep.subr.bf16.mxu1 %v3174_v9  ;;  %v3203_v19 = vcombine.low %v137_v7, %v153_v8  ;;  %v124_v34 = vld [vmem:[#allocation2 + $0x98] sm:$0xff] }
  0x71   :  { %v185_v16 = vld [vmem:[#allocation2 + $0x280] sm:$0xff]  ;;  %v186_v18 = vld [vmem:[#allocation2 + $0x288] sm:$0xff]  ;;  %1046 = vmatpush1.bf16.msra.mxu0 %v3171_v6  ;;  %1087 = vmatpush1.bf16.msra.mxu1 %v3173_v10  ;;  %v3205_v20 = vcombine.low %v138_v12, %v154_v13  ;;  %v3178_v39 = vcombine.high %v108_v33, %v124_v34  ;;  %v139_v40 = vld [vmem:[#allocation2 + $0x110] sm:$0xff]  ;;  %v3177_v46 = vcombine.low %v108_v33, %v124_v34 }
  0x72   :  { %1047 = vmatprep.subr.bf16.mxu0 %v3204_v11  ;;  %v3236_v21 = vcombine.high %v169_v14, %v185_v16  ;;  %1088 = vmatprep.subr.bf16.mxu1 %v3206_v15  ;;  %v3238_v22 = vcombine.high %v170_v17, %v186_v18  ;;  %v201_v23 = vld [vmem:[#allocation2 + $0x300] sm:$0xff]  ;;  %v202_v25 = vld [vmem:[#allocation2 + $0x308] sm:$0xff]  ;;  %v3235_v27 = vcombine.low %v169_v14, %v185_v16  ;;  %v155_v41 = vld [vmem:[#allocation2 + $0x190] sm:$0xff] }
  0x73   :  { %v217_v24 = vld [vmem:[#allocation2 + $0x380] sm:$0xff]  ;;  %v218_v26 = vld [vmem:[#allocation2 + $0x388] sm:$0xff]  ;;  %v3237_v28 = vcombine.low %v170_v17, %v186_v18  ;;  %v140_v43 = vld [vmem:[#allocation2 + $0x118] sm:$0xff]  ;;  %v3208_v47 = vcombine.high %v139_v40, %v155_v41  ;;  %v3207_v53 = vcombine.low %v139_v40, %v155_v41 }
  0x74   :  { %v3268_v29 = vcombine.high %v201_v23, %v217_v24  ;;  %v3270_v30 = vcombine.high %v202_v25, %v218_v26  ;;  %v3267_v35 = vcombine.low %v201_v23, %v217_v24  ;;  %v103_v36 = vld [vmem:[%s4363_s0] sm:$0xff]  ;;  %v3269_v37 = vcombine.low %v202_v25, %v218_v26  ;;  %v156_v44 = vld [vmem:[#allocation2 + $0x198] sm:$0xff]  ;;  %v171_v49 = vld [vmem:[#allocation2 + $0x210] sm:$0xff] }
  0x75   :  { %1048 = vmatpush1.bf16.msra.mxu0 %v3203_v19  ;;  %1089 = vmatpush1.bf16.msra.mxu1 %v3205_v20  ;;  %v3983_v42 = vpack.c.bf16 %v103_v36, %v103_v36  ;;  %v3210_v48 = vcombine.high %v140_v43, %v156_v44  ;;  %v187_v50 = vld [vmem:[#allocation2 + $0x290] sm:$0xff]  ;;  %v172_v51 = vld [vmem:[#allocation2 + $0x218] sm:$0xff]  ;;  %v3209_v54 = vcombine.low %v140_v43, %v156_v44  ;;  %v109_v2 = vld [vmem:[#allocation2 + $0x20] sm:$0xff] }
  0x76   :  { %1049 = vmatprep.subr.bf16.mxu0 %v3236_v21  ;;  %1090 = vmatprep.subr.bf16.mxu1 %v3238_v22  ;;  %v188_v52 = vld [vmem:[#allocation2 + $0x298] sm:$0xff]  ;;  %v3240_v55 = vcombine.high %v171_v49, %v187_v50  ;;  %v203_v57 = vld [vmem:[#allocation2 + $0x310] sm:$0xff]  ;;  %v3239_v61 = vcombine.low %v171_v49, %v187_v50  ;;  %v125_v3 = vld [vmem:[#allocation2 + $0xa0] sm:$0xff] }
  0x77   :  { %v3242_v56 = vcombine.high %v172_v51, %v188_v52  ;;  %v219_v58 = vld [vmem:[#allocation2 + $0x390] sm:$0xff]  ;;  %v204_v59 = vld [vmem:[#allocation2 + $0x318] sm:$0xff]  ;;  %v3241_v62 = vcombine.low %v172_v51, %v188_v52  ;;  %v110_v4 = vld [vmem:[#allocation2 + $0x28] sm:$0xff]  ;;  %v3180_v8 = vcombine.high %v109_v2, %v125_v3  ;;  %v3179_v14 = vcombine.low %v109_v2, %v125_v3 }
  0x78   :  { %v220_v60 = vld [vmem:[#allocation2 + $0x398] sm:$0xff]  ;;  %v3272_v63 = vcombine.high %v203_v57, %v219_v58  ;;  %v126_v5 = vld [vmem:[#allocation2 + $0xa8] sm:$0xff]  ;;  %v3271_v6 = vcombine.low %v203_v57, %v219_v58  ;;  %v141_v10 = vld [vmem:[#allocation2 + $0x120] sm:$0xff] }
  0x79   :  { %1050 = vmatpush1.bf16.msra.mxu0 %v3235_v27  ;;  %1091 = vmatpush1.bf16.msra.mxu1 %v3237_v28  ;;  %v3274_v1 = vcombine.high %v204_v59, %v220_v60  ;;  %v3273_v7 = vcombine.low %v204_v59, %v220_v60  ;;  %v3182_v9 = vcombine.high %v110_v4, %v126_v5  ;;  %v157_v11 = vld [vmem:[#allocation2 + $0x1a0] sm:$0xff]  ;;  %v142_v12 = vld [vmem:[#allocation2 + $0x128] sm:$0xff]  ;;  %v111_v34 = vld [vmem:[#allocation2 + $0x30] sm:$0xff] }
  0x7a   :  { %1051 = vmatprep.subr.bf16.mxu0 %v3268_v29  ;;  %1092 = vmatprep.subr.bf16.mxu1 %v3270_v30  ;;  %v158_v13 = vld [vmem:[#allocation2 + $0x1a8] sm:$0xff]  ;;  %v3181_v15 = vcombine.low %v110_v4, %v126_v5  ;;  %v3212_v16 = vcombine.high %v141_v10, %v157_v11  ;;  %v173_v18 = vld [vmem:[#allocation2 + $0x220] sm:$0xff]  ;;  %v3211_v22 = vcombine.low %v141_v10, %v157_v11  ;;  %v112_v36 = vld [vmem:[#allocation2 + $0x38] sm:$0xff] }
  0x7b   :  { %v3214_v17 = vcombine.high %v142_v12, %v158_v13  ;;  %v189_v19 = vld [vmem:[#allocation2 + $0x2a0] sm:$0xff]  ;;  %v174_v20 = vld [vmem:[#allocation2 + $0x228] sm:$0xff]  ;;  %v3213_v23 = vcombine.low %v142_v12, %v158_v13  ;;  %v143_v41 = vld [vmem:[#allocation2 + $0x130] sm:$0xff] }
  0x7c   :  { %v190_v21 = vld [vmem:[#allocation2 + $0x2a8] sm:$0xff]  ;;  %v3244_v24 = vcombine.high %v173_v18, %v189_v19  ;;  %v205_v26 = vld [vmem:[#allocation2 + $0x320] sm:$0xff]  ;;  %v3243_v30 = vcombine.low %v173_v18, %v189_v19  ;;  %v159_v44 = vld [vmem:[#allocation2 + $0x1b0] sm:$0xff] }
  0x7d   :  { %1052 = vmatpush1.bf16.msra.mxu0 %v3267_v35  ;;  %1093 = vmatpush1.bf16.msra.mxu1 %v3269_v37  ;;  %v3246_v25 = vcombine.high %v174_v20, %v190_v21  ;;  %v221_v27 = vld [vmem:[#allocation2 + $0x3a0] sm:$0xff]  ;;  %v206_v28 = vld [vmem:[#allocation2 + $0x328] sm:$0xff]  ;;  %v3245_v31 = vcombine.low %v174_v20, %v190_v21  ;;  %v127_v35 = vld [vmem:[#allocation2 + $0xb0] sm:$0xff]  ;;  %v3216_v49 = vcombine.high %v143_v41, %v159_v44 }
  0x7e   :  { %1127 = vmatprep.subr.bf16.mxu0 %v3176_v38  ;;  %1168 = vmatprep.subr.bf16.mxu1 %v3178_v39  ;;  %v222_v29 = vld [vmem:[#allocation2 + $0x3a8] sm:$0xff]  ;;  %v3276_v32 = vcombine.high %v205_v26, %v221_v27  ;;  %v128_v37 = vld [vmem:[#allocation2 + $0xb8] sm:$0xff]  ;;  %v3275_v38 = vcombine.low %v205_v26, %v221_v27  ;;  %v3184_v40 = vcombine.high %v111_v34, %v127_v35  ;;  %v175_v50 = vld [vmem:[#allocation2 + $0x230] sm:$0xff] }
  0x7f   :  { %v3278_v33 = vcombine.high %v206_v28, %v222_v29  ;;  %v3277_v39 = vcombine.low %v206_v28, %v222_v29  ;;  %v3186_v43 = vcombine.high %v112_v36, %v128_v37  ;;  %v191_v52 = vld [vmem:[#allocation2 + $0x2b0] sm:$0xff]  ;;  %v113_v3 = vld [vmem:[#allocation2 + $0x40] sm:$0xff]  ;;  %v146_v13 = vld [vmem:[#allocation2 + $0x148] sm:$0xff] }
  0x80   :  { %3299 = vmatmul.mubr.msk.bf16.vlgmr.msra.gmra.mrb[0].mxu0 %vm1041_vm0, %v3983_v42  ;;  %3300 = vmatmul.mubr.msk.bf16.vlgmr.msra.gmra.mrb[0].mxu1 %vm1041_vm0, %v3983_v42  ;;  %v3248_v57 = vcombine.high %v175_v50, %v191_v52  ;;  %v207_v58 = vld [vmem:[#allocation2 + $0x330] sm:$0xff]  ;;  %v129_v5 = vld [vmem:[#allocation2 + $0xc0] sm:$0xff]  ;;  %v178_v21 = vld [vmem:[#allocation2 + $0x248] sm:$0xff] }
  0x81   :  { %1128 = vmatpush1.bf16.msra.mxu0 %v3175_v45  ;;  %1169 = vmatpush1.bf16.msra.mxu1 %v3177_v46  ;;  %v144_v45 = vld [vmem:[#allocation2 + $0x138] sm:$0xff]  ;;  %v223_v60 = vld [vmem:[#allocation2 + $0x3b0] sm:$0xff]  ;;  %v3188_v11 = vcombine.high %v113_v3, %v129_v5  ;;  %v161_v12 = vld [vmem:[#allocation2 + $0x1c0] sm:$0xff] }
  0x82   :  { %1129 = vmatprep.subr.bf16.mxu0 %v3208_v47  ;;  %1170 = vmatprep.subr.bf16.mxu1 %v3210_v48  ;;  %v160_v46 = vld [vmem:[#allocation2 + $0x1b8] sm:$0xff]  ;;  %v3183_v47 = vcombine.low %v111_v34, %v127_v35  ;;  %v3185_v48 = vcombine.low %v112_v36, %v128_v37  ;;  %v3280_v2 = vcombine.high %v207_v58, %v223_v60  ;;  %v193_v18 = vld [vmem:[#allocation2 + $0x2c0] sm:$0xff]  ;;  %v210_v29 = vld [vmem:[#allocation2 + $0x348] sm:$0xff] }
  0x83   :  { %1159 = vmatprep.mubr.bf16.mxu0 %v3862_v0  ;;  %1200 = vmatprep.mubr.bf16.mxu1 %v3862_v0  ;;  %v3218_v51 = vcombine.high %v144_v45, %v160_v46  ;;  %v225_v26 = vld [vmem:[#allocation2 + $0x3c0] sm:$0xff]  ;;  %v131_v34 = vld [vmem:[#allocation2 + $0xd0] sm:$0xff]  ;;  %v116_v37 = vld [vmem:[#allocation2 + $0x58] sm:$0xff] }
  0x85   :  { %1130 = vmatpush1.bf16.msra.mxu0 %v3207_v53  ;;  %1171 = vmatpush1.bf16.msra.mxu1 %v3209_v54  ;;  %v176_v53 = vld [vmem:[#allocation2 + $0x238] sm:$0xff] }
  0x86   :  { %1131 = vmatprep.subr.bf16.mxu0 %v3240_v55  ;;  %1172 = vmatprep.subr.bf16.mxu1 %v3242_v56  ;;  %v192_v54 = vld [vmem:[#allocation2 + $0x2b8] sm:$0xff]  ;;  %v3215_v55 = vcombine.low %v143_v41, %v159_v44  ;;  %v3217_v56 = vcombine.low %v144_v45, %v160_v46  ;;  %v147_v41 = vld [vmem:[#allocation2 + $0x150] sm:$0xff] }
  0x87   :  { %v3250_v59 = vcombine.high %v176_v53, %v192_v54  ;;  %v148_v46 = vld [vmem:[#allocation2 + $0x158] sm:$0xff] }
  0x89   :  { %1132 = vmatpush1.bf16.msra.mxu0 %v3239_v61  ;;  %1173 = vmatpush1.bf16.msra.mxu1 %v3241_v62  ;;  %v208_v61 = vld [vmem:[#allocation2 + $0x338] sm:$0xff] }
  0x8a   :  { %1133 = vmatprep.subr.bf16.mxu0 %v3272_v63  ;;  %1174 = vmatprep.subr.bf16.mxu1 %v3274_v1  ;;  %v224_v62 = vld [vmem:[#allocation2 + $0x3b8] sm:$0xff]  ;;  %v3247_v63 = vcombine.low %v175_v50, %v191_v52  ;;  %v3249_v1 = vcombine.low %v176_v53, %v192_v54  ;;  %v179_v50 = vld [vmem:[#allocation2 + $0x250] sm:$0xff] }
  0x8b   :  { %v3282_v4 = vcombine.high %v208_v61, %v224_v62  ;;  %v3281_v10 = vcombine.low %v208_v61, %v224_v62  ;;  %v180_v54 = vld [vmem:[#allocation2 + $0x258] sm:$0xff] }
  0x8c   :  { %v212_v62 = vld [vmem:[#allocation2 + $0x358] sm:$0xff] }
  0x8d   :  { %1134 = vmatpush1.bf16.msra.mxu0 %v3271_v6  ;;  %1175 = vmatpush1.bf16.msra.mxu1 %v3273_v7  ;;  %v114_v6 = vld [vmem:[#allocation2 + $0x48] sm:$0xff] }
  0x8e   :  { %1209 = vmatprep.subr.bf16.mxu0 %v3180_v8  ;;  %1250 = vmatprep.subr.bf16.mxu1 %v3182_v9  ;;  %v130_v7 = vld [vmem:[#allocation2 + $0xc8] sm:$0xff]  ;;  %v3279_v8 = vcombine.low %v207_v58, %v223_v60  ;;  %v145_v9 = vld [vmem:[#allocation2 + $0x140] sm:$0xff]  ;;  %v211_v58 = vld [vmem:[#allocation2 + $0x350] sm:$0xff] }
  0x8f   :  { %v3189_v19 = vcombine.low %v114_v6, %v130_v7  ;;  %v3220_v20 = vcombine.high %v145_v9, %v161_v12 }
  0x90   :  { %3301 = vmatmul.mubr.msk.bf16.vlgmr.msra.gmra.mrb[4].mxu0 %vm1041_vm0, %v3983_v42  ;;  %3302 = vmatmul.mubr.msk.bf16.vlgmr.msra.gmra.mrb[4].mxu1 %vm1041_vm0, %v3983_v42 }
  0x91   :  { %1210 = vmatpush1.bf16.msra.mxu0 %v3179_v14  ;;  %1251 = vmatpush1.bf16.msra.mxu1 %v3181_v15  ;;  %v162_v14 = vld [vmem:[#allocation2 + $0x1c8] sm:$0xff]  ;;  %v3190_v15 = vcombine.high %v114_v6, %v130_v7 }
  0x92   :  { %1211 = vmatprep.subr.bf16.mxu0 %v3212_v16  ;;  %1252 = vmatprep.subr.bf16.mxu1 %v3214_v17  ;;  %v3187_v16 = vcombine.low %v113_v3, %v129_v5  ;;  %v177_v17 = vld [vmem:[#allocation2 + $0x240] sm:$0xff]  ;;  %v3221_v27 = vcombine.low %v146_v13, %v162_v14  ;;  %v118_v7 = vld [vmem:[#allocation2 + $0x68] sm:$0xff] }
  0x93   :  { %1241 = vmatprep.mubr.bf16.mxu0 %v3862_v0  ;;  %1282 = vmatprep.mubr.bf16.mxu1 %v3862_v0  ;;  %v3252_v28 = vcombine.high %v177_v17, %v193_v18  ;;  %v117_v3 = vld [vmem:[#allocation2 + $0x60] sm:$0xff] }
  0x95   :  { %1212 = vmatpush1.bf16.msra.mxu0 %v3211_v22  ;;  %1253 = vmatpush1.bf16.msra.mxu1 %v3213_v23  ;;  %v194_v22 = vld [vmem:[#allocation2 + $0x2c8] sm:$0xff]  ;;  %v3222_v23 = vcombine.high %v146_v13, %v162_v14 }
  0x96   :  { %1213 = vmatprep.subr.bf16.mxu0 %v3244_v24  ;;  %1254 = vmatprep.subr.bf16.mxu1 %v3246_v25  ;;  %v3219_v24 = vcombine.low %v145_v9, %v161_v12  ;;  %v209_v25 = vld [vmem:[#allocation2 + $0x340] sm:$0xff]  ;;  %v3253_v35 = vcombine.low %v178_v21, %v194_v22 }
  0x97   :  { %v3284_v36 = vcombine.high %v209_v25, %v225_v26  ;;  %v165_v12 = vld [vmem:[#allocation2 + $0x1e0] sm:$0xff] }
  0x99   :  { %1214 = vmatpush1.bf16.msra.mxu0 %v3243_v30  ;;  %1255 = vmatpush1.bf16.msra.mxu1 %v3245_v31  ;;  %v226_v30 = vld [vmem:[#allocation2 + $0x3c8] sm:$0xff]  ;;  %v3254_v31 = vcombine.high %v178_v21, %v194_v22  ;;  %v181_v22 = vld [vmem:[#allocation2 + $0x260] sm:$0xff] }
  0x9a   :  { %1215 = vmatprep.subr.bf16.mxu0 %v3276_v32  ;;  %1256 = vmatprep.subr.bf16.mxu1 %v3278_v33  ;;  %v3251_v32 = vcombine.low %v177_v17, %v193_v18  ;;  %v115_v33 = vld [vmem:[#allocation2 + $0x50] sm:$0xff]  ;;  %v3285_v44 = vcombine.low %v210_v29, %v226_v30  ;;  %v166_v17 = vld [vmem:[#allocation2 + $0x1e8] sm:$0xff] }
  0x9b   :  { %v3192_v45 = vcombine.high %v115_v33, %v131_v34 }
  0x9d   :  { %1216 = vmatpush1.bf16.msra.mxu0 %v3275_v38  ;;  %1257 = vmatpush1.bf16.msra.mxu1 %v3277_v39  ;;  %v132_v38 = vld [vmem:[#allocation2 + $0xd8] sm:$0xff]  ;;  %v3286_v39 = vcombine.high %v210_v29, %v226_v30  ;;  %v213_v30 = vld [vmem:[#allocation2 + $0x360] sm:$0xff] }
  0x9e   :  { %1291 = vmatprep.subr.bf16.mxu0 %v3184_v40  ;;  %1332 = vmatprep.subr.bf16.mxu1 %v3186_v43  ;;  %v3283_v40 = vcombine.low %v209_v25, %v225_v26  ;;  %v163_v43 = vld [vmem:[#allocation2 + $0x1d0] sm:$0xff]  ;;  %v3193_v52 = vcombine.low %v116_v37, %v132_v38  ;;  %v198_v25 = vld [vmem:[#allocation2 + $0x2e8] sm:$0xff] }
  0x9f   :  { %v3224_v53 = vcombine.high %v147_v41, %v163_v43 }
  0xa0   :  { %3303 = vmatmul.mubr.msk.bf16.vlgmr.msra.gmra.mrb[8].mxu0 %vm1041_vm0, %v3983_v42  ;;  %3304 = vmatmul.mubr.msk.bf16.vlgmr.msra.gmra.mrb[8].mxu1 %vm1041_vm0, %v3983_v42 }
  0xa1   :  { %1292 = vmatpush1.bf16.msra.mxu0 %v3183_v47  ;;  %1333 = vmatpush1.bf16.msra.mxu1 %v3185_v48  ;;  %v164_v47 = vld [vmem:[#allocation2 + $0x1d8] sm:$0xff]  ;;  %v3194_v48 = vcombine.high %v116_v37, %v132_v38  ;;  %v119_v38 = vld [vmem:[#allocation2 + $0x70] sm:$0xff] }
  0xa2   :  { %1293 = vmatprep.subr.bf16.mxu0 %v3216_v49  ;;  %1334 = vmatprep.subr.bf16.mxu1 %v3218_v51  ;;  %v3191_v49 = vcombine.low %v115_v33, %v131_v34  ;;  %v195_v51 = vld [vmem:[#allocation2 + $0x2d0] sm:$0xff]  ;;  %v3225_v60 = vcombine.low %v148_v46, %v164_v47  ;;  %v230_v33 = vld [vmem:[#allocation2 + $0x3e8] sm:$0xff] }
  0xa3   :  { %1323 = vmatprep.mubr.bf16.mxu0 %v3862_v0  ;;  %1364 = vmatprep.mubr.bf16.mxu1 %v3862_v0  ;;  %v3256_v61 = vcombine.high %v179_v50, %v195_v51 }
  0xa5   :  { %1294 = vmatpush1.bf16.msra.mxu0 %v3215_v55  ;;  %1335 = vmatpush1.bf16.msra.mxu1 %v3217_v56  ;;  %v196_v55 = vld [vmem:[#allocation2 + $0x2d8] sm:$0xff]  ;;  %v3226_v56 = vcombine.high %v148_v46, %v164_v47  ;;  %v151_v47 = vld [vmem:[#allocation2 + $0x170] sm:$0xff] }
  0xa6   :  { %1295 = vmatprep.subr.bf16.mxu0 %v3248_v57  ;;  %1336 = vmatprep.subr.bf16.mxu1 %v3250_v59  ;;  %v3223_v57 = vcombine.low %v147_v41, %v163_v43  ;;  %v227_v59 = vld [vmem:[#allocation2 + $0x3d0] sm:$0xff]  ;;  %v3257_v5 = vcombine.low %v180_v54, %v196_v55  ;;  %v136_v41 = vld [vmem:[#allocation2 + $0xf8] sm:$0xff] }
  0xa7   :  { %v3288_v6 = vcombine.high %v211_v58, %v227_v59 }
  0xa9   :  { %1296 = vmatpush1.bf16.msra.mxu0 %v3247_v63  ;;  %1337 = vmatpush1.bf16.msra.mxu1 %v3249_v1  ;;  %v228_v63 = vld [vmem:[#allocation2 + $0x3d8] sm:$0xff]  ;;  %v3258_v1 = vcombine.high %v180_v54, %v196_v55  ;;  %v183_v55 = vld [vmem:[#allocation2 + $0x270] sm:$0xff] }
  0xaa   :  { %1297 = vmatprep.subr.bf16.mxu0 %v3280_v2  ;;  %1338 = vmatprep.subr.bf16.mxu1 %v3282_v4  ;;  %v3255_v2 = vcombine.low %v179_v50, %v195_v51  ;;  %v133_v4 = vld [vmem:[#allocation2 + $0xe0] sm:$0xff]  ;;  %v3290_v9 = vcombine.high %v212_v62, %v228_v63  ;;  %v3289_v13 = vcombine.low %v212_v62, %v228_v63  ;;  %v168_v50 = vld [vmem:[#allocation2 + $0x1f8] sm:$0xff]  ;;  %v215_v63 = vld [vmem:[#allocation2 + $0x370] sm:$0xff] }
  0xab   :  { %v3196_v14 = vcombine.high %v117_v3, %v133_v4  ;;  %v3195_v18 = vcombine.low %v117_v3, %v133_v4  ;;  %v232_v3 = vld [vmem:[#allocation2 + $0x3f8] sm:$0xff] }
  0xad   :  { %1298 = vmatpush1.bf16.msra.mxu0 %v3279_v8  ;;  %1339 = vmatpush1.bf16.msra.mxu1 %v3281_v10  ;;  %v134_v8 = vld [vmem:[#allocation2 + $0xe8] sm:$0xff]  ;;  %v3287_v10 = vcombine.low %v211_v58, %v227_v59  ;;  %v200_v58 = vld [vmem:[#allocation2 + $0x2f8] sm:$0xff] }
  0xae   :  { %1373 = vmatprep.subr.bf16.mxu0 %v3188_v11  ;;  %1414 = vmatprep.subr.bf16.mxu1 %v3190_v15  ;;  %v149_v11 = vld [vmem:[#allocation2 + $0x160] sm:$0xff]  ;;  %v3198_v15 = vcombine.high %v118_v7, %v134_v8 }
  0xaf   :  { %v3227_v26 = vcombine.low %v149_v11, %v165_v12 }
  0xb0   :  { %3305 = vmatmul.mubr.msk.bf16.vlgmr.msra.gmra.mrb[12].mxu0 %vm1041_vm0, %v3983_v42  ;;  %3306 = vmatmul.mubr.msk.bf16.vlgmr.msra.gmra.mrb[12].mxu1 %vm1041_vm0, %v3983_v42 }
  0xb1   :  { %1374 = vmatpush1.bf16.msra.mxu0 %v3187_v16  ;;  %1415 = vmatpush1.bf16.msra.mxu1 %v3189_v19  ;;  %v150_v16 = vld [vmem:[#allocation2 + $0x168] sm:$0xff]  ;;  %v3197_v19 = vcombine.low %v118_v7, %v134_v8 }
  0xb2   :  { %1375 = vmatprep.subr.bf16.mxu0 %v3220_v20  ;;  %1416 = vmatprep.subr.bf16.mxu1 %v3222_v23  ;;  %v3228_v20 = vcombine.high %v149_v11, %v165_v12  ;;  %v3230_v21 = vcombine.high %v150_v16, %v166_v17  ;;  %v197_v23 = vld [vmem:[#allocation2 + $0x2e0] sm:$0xff] }
  0xb3   :  { %1405 = vmatprep.mubr.bf16.mxu0 %v3862_v0  ;;  %1446 = vmatprep.mubr.bf16.mxu1 %v3862_v0  ;;  %v3259_v34 = vcombine.low %v181_v22, %v197_v23  ;;  %v3519_v11 = vld [vmem:[#allocation6] ss:$16 sps:$4 sm:$0xff]  }
  0xb4   :  { %v3522_v12 = vld [vmem:[#allocation6 + $0x20] ss:$16 sps:$4 sm:$0xff]  }
  0xb5   :  { %1376 = vmatpush1.bf16.msra.mxu0 %v3219_v24  ;;  %1417 = vmatpush1.bf16.msra.mxu1 %v3221_v27  ;;  %v182_v24 = vld [vmem:[#allocation2 + $0x268] sm:$0xff]  ;;  %v3229_v27 = vcombine.low %v150_v16, %v166_v17  ;;  %v3528_v16 = vld [vmem:[#allocation6 + $0x60] ss:$16 sps:$4 sm:$0xff]   ;;  %v3533_v17 = vld [vmem:[#allocation6 + $0x84] ss:$16 sps:$4 sm:$0xff]  }
  0xb6   :  { %1377 = vmatprep.subr.bf16.mxu0 %v3252_v28  ;;  %1418 = vmatprep.subr.bf16.mxu1 %v3254_v31  ;;  %v3260_v28 = vcombine.high %v181_v22, %v197_v23  ;;  %v3262_v29 = vcombine.high %v182_v24, %v198_v25  ;;  %v229_v31 = vld [vmem:[#allocation2 + $0x3e0] sm:$0xff] }
  0xb7   :  { %v3291_v43 = vcombine.low %v213_v30, %v229_v31  ;;  %v3542_v22 = vld [vmem:[#allocation6 + $0xe4] ss:$16 sps:$4 sm:$0xff]   ;;  %v3540_v23 = vld [vmem:[#allocation6 + $0xe0] ss:$16 sps:$4 sm:$0xff]  }
  0xb9   :  { %1378 = vmatpush1.bf16.msra.mxu0 %v3251_v32  ;;  %1419 = vmatpush1.bf16.msra.mxu1 %v3253_v35  ;;  %v214_v32 = vld [vmem:[#allocation2 + $0x368] sm:$0xff]  ;;  %v3261_v35 = vcombine.low %v182_v24, %v198_v25  ;;  %v3545_v24 = vld [vmem:[#allocation6 + $0x104] ss:$16 sps:$4 sm:$0xff]   ;;  %v3543_v25 = vld [vmem:[#allocation6 + $0x100] ss:$16 sps:$4 sm:$0xff]  }
  0xba   :  { %1379 = vmatprep.subr.bf16.mxu0 %v3284_v36  ;;  %1420 = vmatprep.subr.bf16.mxu1 %v3286_v39  ;;  %v3292_v36 = vcombine.high %v213_v30, %v229_v31  ;;  %v3294_v37 = vcombine.high %v214_v32, %v230_v33  ;;  %v135_v39 = vld [vmem:[#allocation2 + $0xf0] sm:$0xff] }
  0xbb   :  { %v3199_v51 = vcombine.low %v119_v38, %v135_v39  ;;  %v3554_v30 = vld [vmem:[#allocation6 + $0x164] ss:$16 sps:$4 sm:$0xff]   ;;  %v3552_v31 = vld [vmem:[#allocation6 + $0x160] ss:$16 sps:$4 sm:$0xff]  }
  0xbd   :  { %1380 = vmatpush1.bf16.msra.mxu0 %v3283_v40  ;;  %1421 = vmatpush1.bf16.msra.mxu1 %v3285_v44  ;;  %v120_v40 = vld [vmem:[#allocation2 + $0x78] sm:$0xff]  ;;  %v3293_v44 = vcombine.low %v214_v32, %v230_v33  ;;  %v3557_v32 = vld [vmem:[#allocation6 + $0x184] ss:$16 sps:$4 sm:$0xff]   ;;  %v3555_v33 = vld [vmem:[#allocation6 + $0x180] ss:$16 sps:$4 sm:$0xff]  }
  0xbe   :  { %1455 = vmatprep.subr.bf16.mxu0 %v3192_v45  ;;  %1496 = vmatprep.subr.bf16.mxu1 %v3194_v48  ;;  %v3200_v45 = vcombine.high %v119_v38, %v135_v39  ;;  %v3202_v46 = vcombine.high %v120_v40, %v136_v41  ;;  %v167_v48 = vld [vmem:[#allocation2 + $0x1f0] sm:$0xff] }
  0xbf   :  { %v3231_v59 = vcombine.low %v151_v47, %v167_v48  ;;  %v3566_v38 = vld [vmem:[#allocation6 + $0x1e4] ss:$16 sps:$4 sm:$0xff]   ;;  %v3564_v39 = vld [vmem:[#allocation6 + $0x1e0] ss:$16 sps:$4 sm:$0xff]  }
  0xc0   :  { %3307 = vmatmul.mubr.msk.bf16.vlgmr.msra.gmra.mrb[16].mxu0 %vm1041_vm0, %v3983_v42  ;;  %3308 = vmatmul.mubr.msk.bf16.vlgmr.msra.gmra.mrb[16].mxu1 %vm1041_vm0, %v3983_v42 }
  0xc1   :  { %1456 = vmatpush1.bf16.msra.mxu0 %v3191_v49  ;;  %1497 = vmatpush1.bf16.msra.mxu1 %v3193_v52  ;;  %v152_v49 = vld [vmem:[#allocation2 + $0x178] sm:$0xff]  ;;  %v3201_v52 = vcombine.low %v120_v40, %v136_v41  ;;  %v241_v41 = vlaneseq }
  0xc2   :  { %1457 = vmatprep.subr.bf16.mxu0 %v3224_v53  ;;  %1498 = vmatprep.subr.bf16.mxu1 %v3226_v56  ;;  %v3232_v53 = vcombine.high %v151_v47, %v167_v48  ;;  %v3234_v54 = vcombine.high %v152_v49, %v168_v50  ;;  %v199_v56 = vld [vmem:[#allocation2 + $0x2f0] sm:$0xff]  ;;  %v3569_v40 = vld [vmem:[#allocation6 + $0xc] ss:$16 sps:$4 sm:$0xff]  }
  0xc3   :  { %1487 = vmatprep.mubr.bf16.mxu0 %v3862_v0  ;;  %1528 = vmatprep.mubr.bf16.mxu1 %v3862_v0  ;;  %v3263_v4 = vcombine.low %v183_v55, %v199_v56 }
  0xc5   :  { %1458 = vmatpush1.bf16.msra.mxu0 %v3223_v57  ;;  %1499 = vmatpush1.bf16.msra.mxu1 %v3225_v60  ;;  %v184_v57 = vld [vmem:[#allocation2 + $0x278] sm:$0xff]  ;;  %v3233_v60 = vcombine.low %v152_v49, %v168_v50 }
  0xc6   :  { %1459 = vmatprep.subr.bf16.mxu0 %v3256_v61  ;;  %1500 = vmatprep.subr.bf16.mxu1 %v3258_v1  ;;  %v3264_v61 = vcombine.high %v183_v55, %v199_v56  ;;  %v3266_v62 = vcombine.high %v184_v57, %v200_v58  ;;  %v231_v1 = vld [vmem:[#allocation2 + $0x3f0] sm:$0xff] }
  0xc7   :  { %v3295_v8 = vcombine.low %v215_v63, %v231_v1 }
  0xc9   :  { %1460 = vmatpush1.bf16.msra.mxu0 %v3255_v2  ;;  %1501 = vmatpush1.bf16.msra.mxu1 %v3257_v5  ;;  %v216_v2 = vld [vmem:[#allocation2 + $0x378] sm:$0xff]  ;;  %v3265_v5 = vcombine.low %v184_v57, %v200_v58 }
  0xca   :  { %1461 = vmatprep.subr.bf16.mxu0 %v3288_v6  ;;  %1502 = vmatprep.subr.bf16.mxu1 %v3290_v9  ;;  %v3296_v6 = vcombine.high %v215_v63, %v231_v1  ;;  %v3298_v7 = vcombine.high %v216_v2, %v232_v3  ;;  %v3297_v9 = vcombine.low %v216_v2, %v232_v3 }
  0xcd   :  { %1462 = vmatpush1.bf16.msra.mxu0 %v3287_v10  ;;  %1503 = vmatpush1.bf16.msra.mxu1 %v3289_v13  ;;  %v3521_v10 = vld [vmem:[#allocation6 + $0x4] ss:$16 sps:$4 sm:$0xff]  }
  0xce   :  { %1537 = vmatprep.subr.bf16.mxu0 %v3196_v14  ;;  %1578 = vmatprep.subr.bf16.mxu1 %v3198_v15  ;;  %v3527_v13 = vld [vmem:[#allocation6 + $0x44] ss:$16 sps:$4 sm:$0xff]   ;;  %v3525_v14 = vld [vmem:[#allocation6 + $0x40] ss:$16 sps:$4 sm:$0xff]  }
  0xcf   :  { %v3530_v15 = vld [vmem:[#allocation6 + $0x64] ss:$16 sps:$4 sm:$0xff]  }
  0xd0   :  { %3309 = vmatmul.mubr.msk.bf16.vlgmr.msra.gmra.mrb[20].mxu0 %vm1041_vm0, %v3983_v42  ;;  %3310 = vmatmul.mubr.msk.bf16.vlgmr.msra.gmra.mrb[20].mxu1 %vm1041_vm0, %v3983_v42 }
  0xd1   :  { %1538 = vmatpush1.bf16.msra.mxu0 %v3195_v18  ;;  %1579 = vmatpush1.bf16.msra.mxu1 %v3197_v19  ;;  %v3531_v18 = vld [vmem:[#allocation6 + $0x80] ss:$16 sps:$4 sm:$0xff]   ;;  %v3536_v19 = vld [vmem:[#allocation6 + $0xa4] ss:$16 sps:$4 sm:$0xff]  }
  0xd2   :  { %1539 = vmatprep.subr.bf16.mxu0 %v3228_v20  ;;  %1580 = vmatprep.subr.bf16.mxu1 %v3230_v21  ;;  %v3534_v20 = vld [vmem:[#allocation6 + $0xa0] ss:$16 sps:$4 sm:$0xff]  }
  0xd3   :  { %1569 = vmatprep.mubr.bf16.mxu0 %v3862_v0  ;;  %1610 = vmatprep.mubr.bf16.mxu1 %v3862_v0  ;;  %v3537_v21 = vld [vmem:[#allocation6 + $0xc0] ss:$16 sps:$4 sm:$0xff]  }
  0xd5   :  { %1540 = vmatpush1.bf16.msra.mxu0 %v3227_v26  ;;  %1581 = vmatpush1.bf16.msra.mxu1 %v3229_v27  ;;  %v3548_v26 = vld [vmem:[#allocation6 + $0x124] ss:$16 sps:$4 sm:$0xff]   ;;  %v3546_v27 = vld [vmem:[#allocation6 + $0x120] ss:$16 sps:$4 sm:$0xff]  }
  0xd6   :  { %1541 = vmatprep.subr.bf16.mxu0 %v3260_v28  ;;  %1582 = vmatprep.subr.bf16.mxu1 %v3262_v29  ;;  %v3551_v28 = vld [vmem:[#allocation6 + $0x144] ss:$16 sps:$4 sm:$0xff]   ;;  %v3549_v29 = vld [vmem:[#allocation6 + $0x140] ss:$16 sps:$4 sm:$0xff]  }
  0xd9   :  { %1542 = vmatpush1.bf16.msra.mxu0 %v3259_v34  ;;  %1583 = vmatpush1.bf16.msra.mxu1 %v3261_v35  ;;  %v3560_v34 = vld [vmem:[#allocation6 + $0x1a4] ss:$16 sps:$4 sm:$0xff]   ;;  %v3558_v35 = vld [vmem:[#allocation6 + $0x1a0] ss:$16 sps:$4 sm:$0xff]  }
  0xda   :  { %1543 = vmatprep.subr.bf16.mxu0 %v3292_v36  ;;  %1584 = vmatprep.subr.bf16.mxu1 %v3294_v37  ;;  %v3563_v36 = vld [vmem:[#allocation6 + $0x1c4] ss:$16 sps:$4 sm:$0xff]   ;;  %v3561_v37 = vld [vmem:[#allocation6 + $0x1c0] ss:$16 sps:$4 sm:$0xff]  }
  0xdd   :  { %1544 = vmatpush1.bf16.msra.mxu0 %v3291_v43  ;;  %1585 = vmatpush1.bf16.msra.mxu1 %v3293_v44  ;;  %v242_v43 = vshrl.u32 %v241_v41, 7  ;;  %v3584_v41 = vld [vmem:[#allocation6 + $0xac] ss:$16 sps:$4 sm:$0xff]  }
  0xde   :  { %1619 = vmatprep.subr.bf16.mxu0 %v3200_v45  ;;  %1660 = vmatprep.subr.bf16.mxu1 %v3202_v46  ;;  %v233_v45 = vld [vmem:[#allocation4] sm:$0xff] }
  0xdf   :  { %v4031_v44 = vsub.s32 0, %v242_v43  ;;  %v4033_v46 = vsub.s32 2, %v242_v43  ;;  %v4035_v47 = vsub.s32 1, %v242_v43  ;;  %v4037_v48 = vsub.s32 3, %v242_v43 }
  0xe0   :  { %3311 = vmatmul.mubr.msk.bf16.vlgmr.msra.gmra.mrb[24].mxu0 %vm1041_vm0, %v3983_v42  ;;  %3312 = vmatmul.mubr.msk.bf16.vlgmr.msra.gmra.mrb[24].mxu1 %vm1041_vm0, %v3983_v42 }
  0xe1   :  { %1620 = vmatpush1.bf16.msra.mxu0 %v3199_v51  ;;  %1661 = vmatpush1.bf16.msra.mxu1 %v3201_v52  ;;  %v244_v49 = vrot.slane %v233_v45, %v4031_v44  ;;  %v252_v50 = vrot.slane %v233_v45, %v4033_v46  ;;  %v248_v51 = vrot.slane %v233_v45, %v4035_v47 }
  0xe2   :  { %1621 = vmatprep.subr.bf16.mxu0 %v3232_v53  ;;  %1662 = vmatprep.subr.bf16.mxu1 %v3234_v54  ;;  %v256_v52 = vrot.slane %v233_v45, %v4037_v48 }
  0xe3   :  { %1651 = vmatprep.mubr.bf16.mxu0 %v3862_v0  ;;  %1692 = vmatprep.mubr.bf16.mxu1 %v3862_v0  ;;  %v3524_v0 = vld [vmem:[#allocation6 + $0x24] ss:$16 sps:$4 sm:$0xff]  }
  0xe5   :  { %1622 = vmatpush1.bf16.msra.mxu0 %v3231_v59  ;;  %1663 = vmatpush1.bf16.msra.mxu1 %v3233_v60 }
  0xe6   :  { %1623 = vmatprep.subr.bf16.mxu0 %v3264_v61  ;;  %1664 = vmatprep.subr.bf16.mxu1 %v3266_v62 }
  0xe9   :  { %1624 = vmatpush1.bf16.msra.mxu0 %v3263_v4  ;;  %1665 = vmatpush1.bf16.msra.mxu1 %v3265_v5 }
  0xea   :  { %1625 = vmatprep.subr.bf16.mxu0 %v3296_v6  ;;  %1666 = vmatprep.subr.bf16.mxu1 %v3298_v7 }
  0xed   :  { %1626 = vmatpush1.bf16.msra.mxu0 %v3295_v8  ;;  %1667 = vmatpush1.bf16.msra.mxu1 %v3297_v9  ;;  %v3567_v8 = vld [vmem:[#allocation6 + $0x8] ss:$16 sps:$4 sm:$0xff]   ;;  %v3572_v9 = vld [vmem:[#allocation6 + $0x2c] ss:$16 sps:$4 sm:$0xff]  }
  0xee   :  { %2155 = vmatprep.subr.bf16.mxu1 %v3521_v10  ;;  %v4048_v10 = vsub.s32 4, %v242_v43 }
  0xf0   :  { %3313 = vmatmul.mubr.msk.bf16.vlgmr.msra.gmra.mrb[28].mxu0 %vm1041_vm0, %v3983_v42  ;;  %3314 = vmatmul.mubr.msk.bf16.vlgmr.msra.gmra.mrb[28].mxu1 %vm1041_vm0, %v3983_v42  ;;  %v3539_v42 = vld [vmem:[#allocation6 + $0xc4] ss:$16 sps:$4 sm:$0xff]  }
  0xf1   :  { %2156 = vmatpush1.bf16.msra.mxu1 %v3519_v11  ;;  %v4051_v11 = vsub.s32 6, %v242_v43 }
  0xf2   :  { %2157 = vmatprep.subr.bf16.mxu1 %v3524_v0  ;;  %v4053_v0 = vsub.s32 5, %v242_v43 }
  0xf5   :  { %2158 = vmatpush1.bf16.msra.mxu1 %v3522_v12  ;;  %v4055_v12 = vsub.s32 7, %v242_v43  ;;  %v4067_v43 = vld [vmem:[#allocation4 + $0x8] sm:$0xff] }
  0xf6   :  { %2159 = vmatprep.subr.bf16.mxu1 %v3527_v13  ;;  %v3570_v13 = vld [vmem:[#allocation6 + $0x28] ss:$16 sps:$4 sm:$0xff]  }
  0xf9   :  { %2160 = vmatpush1.bf16.msra.mxu1 %v3525_v14  ;;  %v3575_v14 = vld [vmem:[#allocation6 + $0x4c] ss:$16 sps:$4 sm:$0xff]  }
  0xfa   :  { %2161 = vmatprep.subr.bf16.mxu1 %v3530_v15  ;;  %v260_v15 = vrot.slane %v233_v45, %v4048_v10 }
  0xfd   :  { %2162 = vmatpush1.bf16.msra.mxu1 %v3528_v16  ;;  %v268_v16 = vrot.slane %v233_v45, %v4051_v11 }
  0xfe   :  { %2163 = vmatprep.subr.bf16.mxu1 %v3533_v17  ;;  %v264_v17 = vrot.slane %v233_v45, %v4053_v0 }
 0x101   :  { %2164 = vmatpush1.bf16.msra.mxu1 %v3531_v18  ;;  %v272_v18 = vrot.slane %v233_v45, %v4055_v12  ;;  %v3582_v45 = vld [vmem:[#allocation6 + $0xa8] ss:$16 sps:$4 sm:$0xff]  }
 0x102   :  { %2165 = vmatprep.subr.bf16.mxu1 %v3536_v19  ;;  %v3573_v19 = vld [vmem:[#allocation6 + $0x48] ss:$16 sps:$4 sm:$0xff]  }
 0x105   :  { %2166 = vmatpush1.bf16.msra.mxu1 %v3534_v20 }
 0x106   :  { %2167 = vmatprep.subr.bf16.mxu1 %v3539_v42  ;;  %v3578_v42 = vld [vmem:[#allocation6 + $0x6c] ss:$16 sps:$4 sm:$0xff]  }
 0x109   :  { %2168 = vmatpush1.bf16.msra.mxu1 %v3537_v21 }
 0x10a   :  { %2169 = vmatprep.subr.bf16.mxu1 %v3542_v22 }
 0x10d   :  { %2170 = vmatpush1.bf16.msra.mxu1 %v3540_v23 }
 0x10e   :  { %2171 = vmatprep.subr.bf16.mxu1 %v3545_v24 }
 0x111   :  { %2172 = vmatpush1.bf16.msra.mxu1 %v3543_v25 }
 0x112   :  { %2173 = vmatprep.subr.bf16.mxu1 %v3548_v26 }
 0x115   :  { %2174 = vmatpush1.bf16.msra.mxu1 %v3546_v27 }
 0x116   :  { %2175 = vmatprep.subr.bf16.mxu1 %v3551_v28 }
 0x119   :  { %2176 = vmatpush1.bf16.msra.mxu1 %v3549_v29 }
 0x11a   :  { %2177 = vmatprep.subr.bf16.mxu1 %v3554_v30 }
 0x11d   :  { %2178 = vmatpush1.bf16.msra.mxu1 %v3552_v31 }
 0x11e   :  { %2179 = vmatprep.subr.bf16.mxu1 %v3557_v32  ;;  %v3576_v32 = vld [vmem:[#allocation6 + $0x68] ss:$16 sps:$4 sm:$0xff]  }
 0x121   :  { %2180 = vmatpush1.bf16.msra.mxu1 %v3555_v33 }
 0x122   :  { %2181 = vmatprep.subr.bf16.mxu1 %v3560_v34 }
 0x125   :  { %2182 = vmatpush1.bf16.msra.mxu1 %v3558_v35 }
 0x126   :  { %2183 = vmatprep.subr.bf16.mxu1 %v3563_v36  ;;  %v3581_v36 = vld [vmem:[#allocation6 + $0x8c] ss:$16 sps:$4 sm:$0xff]  }
 0x129   :  { %2184 = vmatpush1.bf16.msra.mxu1 %v3561_v37 }
 0x12a   :  { %2185 = vmatprep.subr.bf16.mxu1 %v3566_v38 }
 0x12d   :  { %2186 = vmatpush1.bf16.msra.mxu1 %v3564_v39 }
 0x12e   :  { %2268 = vmatprep.subr.bf16.mxu1 %v3569_v40  ;;  %v3579_v40 = vld [vmem:[#allocation6 + $0x88] ss:$16 sps:$4 sm:$0xff]  }
 0x153   :  { %v1079_v53 = vpop.f32.mrb[0].mxu0  ;;  %v1120_v55 = vpop.f32.mrb[0].mxu1 }
 0x154   :  { %v1080_v54 = vadd.f32 %v1079_v53, %v244_v49  ;;  %v1081_v56 = vpop.f32.mrb[1].mxu0  ;;  %v1121_v57 = vadd.f32 %v1120_v55, %v252_v50  ;;  %v1122_v59 = vpop.f32.mrb[1].mxu1  ;;  %v3587_v49 = vld [vmem:[#allocation6 + $0xcc] ss:$16 sps:$4 sm:$0xff]   ;;  %v276_v50 = vrot.slane %v4067_v43, %v4031_v44  ;;  %v288_v53 = vrot.slane %v4067_v43, %v4037_v48 }
 0x155   :  { %v1082_v58 = vadd.f32 %v1081_v56, %v248_v51  ;;  %v1083_v60 = vpop.f32.mrb[2].mxu0  ;;  %v1123_v62 = vadd.f32 %v1122_v59, %v256_v52  ;;  %v1124_v63 = vpop.f32.mrb[2].mxu1  ;;  %v284_v51 = vrot.slane %v4067_v43, %v4033_v46  ;;  %v280_v52 = vrot.slane %v4067_v43, %v4035_v47  ;;  %v3590_v56 = vld [vmem:[#allocation6 + $0xec] ss:$16 sps:$4 sm:$0xff]  }
 0x156   :  { %v1701_v61 = vmax.f32 %v1080_v54, 0.0  ;;  %v1084_v1 = vpop.f32.mrb[3].mxu0  ;;  %v1703_v2 = vmax.f32 %v1121_v57, 0.0  ;;  %v1125_v4 = vpop.f32.mrb[3].mxu1  ;;  %v3585_v54 = vld [vmem:[#allocation6 + $0xc8] ss:$16 sps:$4 sm:$0xff]  }
 0x157   :  { %v1702_v3 = vmax.f32 %v1082_v58, 0.0  ;;  %v1704_v5 = vmax.f32 %v1123_v62, 0.0  ;;  %v3588_v1 = vld [vmem:[#allocation6 + $0xe8] ss:$16 sps:$4 sm:$0xff]  }
 0x158   :  { %v4043_v6 = vpack.c.bf16 %v1703_v2, %v1701_v61  ;;  %v3593_v2 = vld [vmem:[#allocation6 + $0x10c] ss:$16 sps:$4 sm:$0xff]  }
 0x159   :  { %v4045_v7 = vpack.c.bf16 %v1704_v5, %v1702_v3 }
 0x15b   :  { %2187 = vmatprep.mubr.bf16.mxu1 %v4045_v7 }
 0x15c   :  { %2188 = vmatmul.mubr.bf16.vlgmr.msra.gmra.mrb[32].mxu1 %v4043_v6 }
 0x15d   :  { %2269 = vmatpush1.bf16.msra.mxu1 %v3567_v8 }
 0x15e   :  { %2270 = vmatprep.subr.bf16.mxu1 %v3572_v9  ;;  %v3615_v9 = vld [vmem:[#allocation9] ss:$8 sps:$4 sm:$0xff]  }
 0x161   :  { %2271 = vmatpush1.bf16.msra.mxu1 %v3570_v13 }
 0x162   :  { %2272 = vmatprep.subr.bf16.mxu1 %v3575_v14 }
 0x163   :  { %v1161_v20 = vpop.f32.mrb[4].mxu0  ;;  %v1202_v22 = vpop.f32.mrb[4].mxu1 }
 0x164   :  { %v1162_v21 = vadd.f32 %v1161_v20, %v260_v15  ;;  %v1163_v23 = vpop.f32.mrb[5].mxu0  ;;  %v1203_v24 = vadd.f32 %v1202_v22, %v268_v16  ;;  %v1204_v26 = vpop.f32.mrb[5].mxu1  ;;  %v3617_v16 = vld [vmem:[#allocation9 + $0x4] ss:$8 sps:$4 sm:$0xff]  }
 0x165   :  { %v1164_v25 = vadd.f32 %v1163_v23, %v264_v17  ;;  %v1165_v27 = vpop.f32.mrb[6].mxu0  ;;  %v1205_v29 = vadd.f32 %v1204_v26, %v272_v18  ;;  %v1206_v30 = vpop.f32.mrb[6].mxu1  ;;  %2273 = vmatpush1.bf16.msra.mxu1 %v3573_v19  ;;  %2873 = vmatprep.subr.bf16.mxu0 %v3617_v16  ;;  %v3591_v20 = vld [vmem:[#allocation6 + $0x108] ss:$16 sps:$4 sm:$0xff]   ;;  %v3618_v23 = vld [vmem:[#allocation9 + $0x10] ss:$8 sps:$4 sm:$0xff]   ;;  %v292_v26 = vrot.slane %v4067_v43, %v4048_v10 }
 0x166   :  { %v1705_v28 = vmax.f32 %v1162_v21, 0.0  ;;  %v1166_v31 = vpop.f32.mrb[7].mxu0  ;;  %v1707_v33 = vmax.f32 %v1203_v24, 0.0  ;;  %v1207_v35 = vpop.f32.mrb[7].mxu1  ;;  %2274 = vmatprep.subr.bf16.mxu1 %v3578_v42  ;;  %2874 = vmatpush1.bf16.msra.mxu0 %v3615_v9  ;;  %v3596_v42 = vld [vmem:[#allocation6 + $0x12c] ss:$16 sps:$4 sm:$0xff]   ;;  %v304_v30 = vrot.slane %v4067_v43, %v4055_v12 }
 0x167   :  { %v1706_v34 = vmax.f32 %v1164_v25, 0.0  ;;  %v1708_v37 = vmax.f32 %v1205_v29, 0.0  ;;  %v3620_v21 = vld [vmem:[#allocation9 + $0x14] ss:$8 sps:$4 sm:$0xff]   ;;  %v3623_v24 = vld [vmem:[#allocation9 + $0x24] ss:$8 sps:$4 sm:$0xff]   ;;  %v296_v29 = vrot.slane %v4067_v43, %v4053_v0 }
 0x168   :  { %v4061_v38 = vpack.c.bf16 %v1707_v33, %v1705_v28  ;;  %v3594_v22 = vld [vmem:[#allocation6 + $0x128] ss:$16 sps:$4 sm:$0xff]   ;;  %v3599_v25 = vld [vmem:[#allocation6 + $0x14c] ss:$16 sps:$4 sm:$0xff]   ;;  %2875 = vmatprep.subr.bf16.mxu0 %v3620_v21  ;;  %v300_v28 = vrot.slane %v4067_v43, %v4051_v11 }
 0x169   :  { %v4063_v39 = vpack.c.bf16 %v1708_v37, %v1706_v34  ;;  %2275 = vmatpush1.bf16.msra.mxu1 %v3576_v32  ;;  %v3621_v27 = vld [vmem:[#allocation9 + $0x20] ss:$8 sps:$4 sm:$0xff]   ;;  %v3597_v31 = vld [vmem:[#allocation6 + $0x148] ss:$16 sps:$4 sm:$0xff]   ;;  %v3624_v43 = vld [vmem:[#allocation9 + $0x30] ss:$8 sps:$4 sm:$0xff]  }
 0x16a   :  { %2276 = vmatprep.subr.bf16.mxu1 %v3581_v36  ;;  %2876 = vmatpush1.bf16.msra.mxu0 %v3618_v23  ;;  %v3602_v33 = vld [vmem:[#allocation6 + $0x16c] ss:$16 sps:$4 sm:$0xff]   ;;  %v3635_v9 = vld [vmem:[#allocation9 + $0x64] ss:$8 sps:$4 sm:$0xff]  }
 0x16b   :  { %2197 = vmatprep.mubr.bf16.mxu1 %v4063_v39  ;;  %2877 = vmatprep.subr.bf16.mxu0 %v3623_v24  ;;  %v3609_v21 = vld [vmem:[#allocation6 + $0x1c8] ss:$16 sps:$4 sm:$0xff]   ;;  %v3614_v23 = vld [vmem:[#allocation6 + $0x1ec] ss:$16 sps:$4 sm:$0xff]  }
 0x16c   :  { %2198 = vmatmul.mubr.bf16.gmra.mrb[36].mxu1 %v4061_v38 }
 0x16d   :  { %2277 = vmatpush1.bf16.msra.mxu1 %v3579_v40 }
 0x16e   :  { %2278 = vmatprep.subr.bf16.mxu1 %v3584_v41  ;;  %2878 = vmatpush1.bf16.msra.mxu0 %v3621_v27  ;;  %v3636_v27 = vld [vmem:[#allocation9 + $0x70] ss:$8 sps:$4 sm:$0xff]  }
 0x171   :  { %2279 = vmatpush1.bf16.msra.mxu1 %v3582_v45 }
 0x172   :  { %2280 = vmatprep.subr.bf16.mxu1 %v3587_v49  ;;  %v3600_v49 = vld [vmem:[#allocation6 + $0x168] ss:$16 sps:$4 sm:$0xff]  }
 0x173   :  { %v1243_v55 = vpop.f32.mrb[8].mxu0  ;;  %v1284_v58 = vpop.f32.mrb[8].mxu1 }
 0x174   :  { %v1244_v57 = vadd.f32 %v1243_v55, %v276_v50  ;;  %v1245_v59 = vpop.f32.mrb[9].mxu0  ;;  %v1285_v60 = vadd.f32 %v1284_v58, %v284_v51  ;;  %v1286_v62 = vpop.f32.mrb[9].mxu1  ;;  %v3626_v50 = vld [vmem:[#allocation9 + $0x34] ss:$8 sps:$4 sm:$0xff]   ;;  %v3605_v58 = vld [vmem:[#allocation6 + $0x18c] ss:$16 sps:$4 sm:$0xff]  }
 0x175   :  { %v1246_v61 = vadd.f32 %v1245_v59, %v280_v52  ;;  %v1247_v63 = vpop.f32.mrb[10].mxu0  ;;  %v1287_v4 = vadd.f32 %v1286_v62, %v288_v53  ;;  %v1288_v5 = vpop.f32.mrb[10].mxu1  ;;  %2281 = vmatpush1.bf16.msra.mxu1 %v3585_v54  ;;  %2879 = vmatprep.subr.bf16.mxu0 %v3626_v50  ;;  %v3639_v50 = vld [vmem:[#allocation9 + $0x80] ss:$8 sps:$4 sm:$0xff]  }
 0x176   :  { %v1709_v3 = vmax.f32 %v1244_v57, 0.0  ;;  %v1248_v8 = vpop.f32.mrb[11].mxu0  ;;  %v1711_v13 = vmax.f32 %v1285_v60, 0.0  ;;  %v1289_v15 = vpop.f32.mrb[11].mxu1  ;;  %2282 = vmatprep.subr.bf16.mxu1 %v3590_v56  ;;  %2880 = vmatpush1.bf16.msra.mxu0 %v3624_v43  ;;  %v3627_v60 = vld [vmem:[#allocation9 + $0x40] ss:$8 sps:$4 sm:$0xff]  }
 0x177   :  { %v1710_v14 = vmax.f32 %v1246_v61, 0.0  ;;  %v1712_v17 = vmax.f32 %v1287_v4, 0.0  ;;  %v3629_v61 = vld [vmem:[#allocation9 + $0x44] ss:$8 sps:$4 sm:$0xff]   ;;  %v3630_v4 = vld [vmem:[#allocation9 + $0x50] ss:$8 sps:$4 sm:$0xff]  }
 0x178   :  { %v4077_v18 = vpack.c.bf16 %v1711_v13, %v1709_v3  ;;  %2881 = vmatprep.subr.bf16.mxu0 %v3629_v61  ;;  %v4097_v3 = vld [vmem:[#allocation4 + $0x10] sm:$0xff]  ;;  %v3632_v5 = vld [vmem:[#allocation9 + $0x54] ss:$8 sps:$4 sm:$0xff]   ;;  %v3611_v13 = vld [vmem:[#allocation6 + $0x1cc] ss:$16 sps:$4 sm:$0xff]  }
 0x179   :  { %v4079_v19 = vpack.c.bf16 %v1712_v17, %v1710_v14  ;;  %2283 = vmatpush1.bf16.msra.mxu1 %v3588_v1  ;;  %v3603_v1 = vld [vmem:[#allocation6 + $0x188] ss:$16 sps:$4 sm:$0xff]   ;;  %v308_v14 = vrot.slane %v4097_v3, %v4031_v44  ;;  %v3633_v15 = vld [vmem:[#allocation9 + $0x60] ss:$8 sps:$4 sm:$0xff]   ;;  %v316_v16 = vrot.slane %v4097_v3, %v4033_v46  ;;  %v312_v17 = vrot.slane %v4097_v3, %v4035_v47 }
 0x17a   :  { %2284 = vmatprep.subr.bf16.mxu1 %v3593_v2  ;;  %v3608_v2 = vld [vmem:[#allocation6 + $0x1ac] ss:$16 sps:$4 sm:$0xff]   ;;  %2882 = vmatpush1.bf16.msra.mxu0 %v3627_v60  ;;  %v3606_v8 = vld [vmem:[#allocation6 + $0x1a8] ss:$16 sps:$4 sm:$0xff]   ;;  %v336_v60 = vrot.slane %v4097_v3, %v4055_v12 }
 0x17b   :  { %2207 = vmatprep.mubr.bf16.mxu1 %v4079_v19  ;;  %2883 = vmatprep.subr.bf16.mxu0 %v3632_v5  ;;  %v3647_v43 = vld [vmem:[#allocation9 + $0xa4] ss:$8 sps:$4 sm:$0xff]   ;;  %v3648_v5 = vld [vmem:[#allocation9 + $0xb0] ss:$8 sps:$4 sm:$0xff]  }
 0x17c   :  { %2208 = vmatmul.mubr.bf16.gmra.mrb[40].mxu1 %v4077_v18 }
 0x17d   :  { %2285 = vmatpush1.bf16.msra.mxu1 %v3591_v20  ;;  %v3638_v20 = vld [vmem:[#allocation9 + $0x74] ss:$8 sps:$4 sm:$0xff]  }
 0x17e   :  { %2286 = vmatprep.subr.bf16.mxu1 %v3596_v42  ;;  %2884 = vmatpush1.bf16.msra.mxu0 %v3630_v4  ;;  %v320_v42 = vrot.slane %v4097_v3, %v4037_v48 }
 0x17f   :  { %2885 = vmatprep.subr.bf16.mxu0 %v3635_v9 }
 0x181   :  { %2287 = vmatpush1.bf16.msra.mxu1 %v3594_v22 }
 0x182   :  { %2288 = vmatprep.subr.bf16.mxu1 %v3599_v25  ;;  %2886 = vmatpush1.bf16.msra.mxu0 %v3633_v15  ;;  %v3653_v15 = vld [vmem:[#allocation9 + $0xc4] ss:$8 sps:$4 sm:$0xff]  }
 0x183   :  { %v1325_v32 = vpop.f32.mrb[12].mxu0  ;;  %v1366_v35 = vpop.f32.mrb[12].mxu1  ;;  %2887 = vmatprep.subr.bf16.mxu0 %v3638_v20 }
 0x184   :  { %v1326_v34 = vadd.f32 %v1325_v32, %v292_v26  ;;  %v1327_v36 = vpop.f32.mrb[13].mxu0  ;;  %v1367_v37 = vadd.f32 %v1366_v35, %v300_v28  ;;  %v1368_v41 = vpop.f32.mrb[13].mxu1  ;;  %v3641_v32 = vld [vmem:[#allocation9 + $0x84] ss:$8 sps:$4 sm:$0xff]  }
 0x185   :  { %v1328_v40 = vadd.f32 %v1327_v36, %v296_v29  ;;  %v1329_v45 = vpop.f32.mrb[14].mxu0  ;;  %v1369_v52 = vadd.f32 %v1368_v41, %v304_v30  ;;  %v1370_v53 = vpop.f32.mrb[14].mxu1  ;;  %2289 = vmatpush1.bf16.msra.mxu1 %v3597_v31 }
 0x186   :  { %v1713_v51 = vmax.f32 %v1326_v34, 0.0  ;;  %v1330_v54 = vpop.f32.mrb[15].mxu0  ;;  %v1715_v55 = vmax.f32 %v1367_v37, 0.0  ;;  %v1371_v57 = vpop.f32.mrb[15].mxu1  ;;  %2290 = vmatprep.subr.bf16.mxu1 %v3602_v33  ;;  %v3612_v37 = vld [vmem:[#allocation6 + $0x1e8] ss:$16 sps:$4 sm:$0xff]   ;;  %2888 = vmatpush1.bf16.msra.mxu0 %v3636_v27 }
 0x187   :  { %v1714_v56 = vmax.f32 %v1328_v40, 0.0  ;;  %v1716_v59 = vmax.f32 %v1369_v52, 0.0  ;;  %2889 = vmatprep.subr.bf16.mxu0 %v3641_v32  ;;  %v3644_v52 = vld [vmem:[#allocation9 + $0x94] ss:$8 sps:$4 sm:$0xff]   ;;  %v3642_v54 = vld [vmem:[#allocation9 + $0x90] ss:$8 sps:$4 sm:$0xff]   ;;  %v332_v57 = vrot.slane %v4097_v3, %v4051_v11 }
 0x188   :  { %v4091_v62 = vpack.c.bf16 %v1715_v55, %v1713_v51  ;;  %v324_v55 = vrot.slane %v4097_v3, %v4048_v10 }
 0x189   :  { %v4093_v63 = vpack.c.bf16 %v1716_v59, %v1714_v56  ;;  %2291 = vmatpush1.bf16.msra.mxu1 %v3600_v49  ;;  %v3645_v56 = vld [vmem:[#allocation9 + $0xa0] ss:$8 sps:$4 sm:$0xff]   ;;  %v3650_v59 = vld [vmem:[#allocation9 + $0xb4] ss:$8 sps:$4 sm:$0xff]  }
 0x18a   :  { %2292 = vmatprep.subr.bf16.mxu1 %v3605_v58  ;;  %2890 = vmatpush1.bf16.msra.mxu0 %v3639_v50  ;;  %v328_v58 = vrot.slane %v4097_v3, %v4053_v0 }
 0x18b   :  { %2217 = vmatprep.mubr.bf16.mxu1 %v4093_v63  ;;  %2891 = vmatprep.subr.bf16.mxu0 %v3644_v52 }
 0x18c   :  { %2218 = vmatmul.mubr.bf16.gmra.mrb[44].mxu1 %v4091_v62 }
 0x18d   :  { %2293 = vmatpush1.bf16.msra.mxu1 %v3603_v1 }
 0x18e   :  { %2294 = vmatprep.subr.bf16.mxu1 %v3608_v2  ;;  %2892 = vmatpush1.bf16.msra.mxu0 %v3642_v54  ;;  %v3662_v54 = vld [vmem:[#allocation9 + $0xf4] ss:$8 sps:$4 sm:$0xff]  }
 0x18f   :  { %2893 = vmatprep.subr.bf16.mxu0 %v3647_v43 }
 0x191   :  { %2295 = vmatpush1.bf16.msra.mxu1 %v3606_v8 }
 0x192   :  { %2296 = vmatprep.subr.bf16.mxu1 %v3611_v13  ;;  %2894 = vmatpush1.bf16.msra.mxu0 %v3645_v56 }
 0x193   :  { %v1407_v22 = vpop.f32.mrb[16].mxu0  ;;  %v1448_v25 = vpop.f32.mrb[16].mxu1  ;;  %2895 = vmatprep.subr.bf16.mxu0 %v3650_v59 }
 0x194   :  { %v1408_v24 = vadd.f32 %v1407_v22, %v308_v14  ;;  %v1409_v26 = vpop.f32.mrb[17].mxu0  ;;  %v1449_v28 = vadd.f32 %v1448_v25, %v316_v16  ;;  %v1450_v30 = vpop.f32.mrb[17].mxu1 }
 0x195   :  { %v1410_v29 = vadd.f32 %v1409_v26, %v312_v17  ;;  %v1411_v31 = vpop.f32.mrb[18].mxu0  ;;  %v1451_v34 = vadd.f32 %v1450_v30, %v320_v42  ;;  %v1452_v35 = vpop.f32.mrb[18].mxu1  ;;  %2297 = vmatpush1.bf16.msra.mxu1 %v3609_v21  ;;  %v3656_v26 = vld [vmem:[#allocation9 + $0xd4] ss:$8 sps:$4 sm:$0xff]  }
 0x196   :  { %v1717_v33 = vmax.f32 %v1408_v24, 0.0  ;;  %v1412_v36 = vpop.f32.mrb[19].mxu0  ;;  %v1719_v40 = vmax.f32 %v1449_v28, 0.0  ;;  %v1453_v45 = vpop.f32.mrb[19].mxu1  ;;  %2298 = vmatprep.subr.bf16.mxu1 %v3614_v23  ;;  %2896 = vmatpush1.bf16.msra.mxu0 %v3648_v5  ;;  %v3651_v24 = vld [vmem:[#allocation9 + $0xc0] ss:$8 sps:$4 sm:$0xff]  }
 0x197   :  { %v1718_v41 = vmax.f32 %v1410_v29, 0.0  ;;  %v1720_v49 = vmax.f32 %v1451_v34, 0.0  ;;  %2897 = vmatprep.subr.bf16.mxu0 %v3653_v15  ;;  %v3654_v28 = vld [vmem:[#allocation9 + $0xd0] ss:$8 sps:$4 sm:$0xff]   ;;  %v3657_v35 = vld [vmem:[#allocation9 + $0xe0] ss:$8 sps:$4 sm:$0xff]  }
 0x198   :  { %v4107_v51 = vpack.c.bf16 %v1719_v40, %v1717_v33  ;;  %v236_v29 = vld [vmem:[#allocation4 + $0x18] sm:$0xff]  ;;  %v3659_v33 = vld [vmem:[#allocation9 + $0xe4] ss:$8 sps:$4 sm:$0xff]  }
 0x199   :  { %v4109_v53 = vpack.c.bf16 %v1720_v49, %v1718_v41  ;;  %2299 = vmatpush1.bf16.msra.mxu1 %v3612_v37  ;;  %v340_v30 = vrot.slane %v236_v29, %v4031_v44  ;;  %v348_v31 = vrot.slane %v236_v29, %v4033_v46  ;;  %v344_v32 = vrot.slane %v236_v29, %v4035_v47 }
 0x19a   :  { %2898 = vmatpush1.bf16.msra.mxu0 %v3651_v24  ;;  %v352_v34 = vrot.slane %v236_v29, %v4037_v48  ;;  %v356_v5 = vrot.slane %v236_v29, %v4048_v10 }
 0x19b   :  { %2227 = vmatprep.mubr.bf16.mxu1 %v4109_v53  ;;  %2899 = vmatprep.subr.bf16.mxu0 %v3656_v26 }
 0x19c   :  { %2228 = vmatmul.mubr.bf16.gmra.mrb[48].mxu1 %v4107_v51 }
 0x19e   :  { %2900 = vmatpush1.bf16.msra.mxu0 %v3654_v28 }
 0x19f   :  { %2901 = vmatprep.subr.bf16.mxu0 %v3659_v33 }
 0x1a2   :  { %2902 = vmatpush1.bf16.msra.mxu0 %v3657_v35 }
 0x1a3   :  { %v1489_v61 = vpop.f32.mrb[20].mxu0  ;;  %v1530_v2 = vpop.f32.mrb[20].mxu1  ;;  %2903 = vmatprep.subr.bf16.mxu0 %v3662_v54  ;;  %v3674_v54 = vld [vmem:[#allocation9 + $0x134] ss:$8 sps:$4 sm:$0xff]  }
 0x1a4   :  { %v1490_v1 = vadd.f32 %v1489_v61, %v324_v55  ;;  %v1491_v4 = vpop.f32.mrb[21].mxu0  ;;  %v1531_v8 = vadd.f32 %v1530_v2, %v332_v57  ;;  %v1532_v13 = vpop.f32.mrb[21].mxu1 }
 0x1a5   :  { %v1492_v9 = vadd.f32 %v1491_v4, %v328_v58  ;;  %v1493_v14 = vpop.f32.mrb[22].mxu0  ;;  %v1533_v17 = vadd.f32 %v1532_v13, %v336_v60  ;;  %v1534_v20 = vpop.f32.mrb[22].mxu1  ;;  %v3660_v58 = vld [vmem:[#allocation9 + $0xf0] ss:$8 sps:$4 sm:$0xff]   ;;  %v368_v13 = vrot.slane %v236_v29, %v4055_v12  ;;  %v3665_v12 = vld [vmem:[#allocation9 + $0x104] ss:$8 sps:$4 sm:$0xff]  }
 0x1a6   :  { %v1721_v16 = vmax.f32 %v1490_v1, 0.0  ;;  %v1494_v42 = vpop.f32.mrb[23].mxu0  ;;  %v1723_v21 = vmax.f32 %v1531_v8, 0.0  ;;  %v1535_v23 = vpop.f32.mrb[23].mxu1  ;;  %2904 = vmatpush1.bf16.msra.mxu0 %v3660_v58  ;;  %v364_v8 = vrot.slane %v236_v29, %v4051_v11 }
 0x1a7   :  { %v1722_v22 = vmax.f32 %v1492_v9, 0.0  ;;  %v1724_v3 = vmax.f32 %v1533_v17, 0.0  ;;  %v360_v9 = vrot.slane %v236_v29, %v4053_v0  ;;  %2986 = vmatprep.subr.bf16.mxu0 %v3665_v12 }
 0x1a8   :  { %v4121_v25 = vpack.c.bf16 %v1723_v21, %v1721_v16 }
 0x1a9   :  { %v4123_v27 = vpack.c.bf16 %v1724_v3, %v1722_v22 }
 0x1ab   :  { %2237 = vmatprep.mubr.bf16.mxu1 %v4123_v27 }
 0x1ac   :  { %2238 = vmatmul.mubr.bf16.gmra.mrb[52].mxu1 %v4121_v25 }
 0x1b3   :  { %v1571_v36 = vpop.f32.mrb[24].mxu0  ;;  %v1612_v40 = vpop.f32.mrb[24].mxu1 }
 0x1b4   :  { %v1572_v37 = vadd.f32 %v1571_v36, %v340_v30  ;;  %v1573_v41 = vpop.f32.mrb[25].mxu0  ;;  %v1613_v45 = vadd.f32 %v1612_v40, %v348_v31  ;;  %v1614_v50 = vpop.f32.mrb[25].mxu1  ;;  %v3663_v36 = vld [vmem:[#allocation9 + $0x100] ss:$8 sps:$4 sm:$0xff]   ;;  %v3666_v40 = vld [vmem:[#allocation9 + $0x110] ss:$8 sps:$4 sm:$0xff]  }
 0x1b5   :  { %v1574_v49 = vadd.f32 %v1573_v41, %v344_v32  ;;  %v1575_v52 = vpop.f32.mrb[26].mxu0  ;;  %v1615_v55 = vadd.f32 %v1614_v50, %v352_v34  ;;  %v1616_v56 = vpop.f32.mrb[26].mxu1  ;;  %v3671_v41 = vld [vmem:[#allocation9 + $0x124] ss:$8 sps:$4 sm:$0xff]  }
 0x1b6   :  { %v1725_v43 = vmax.f32 %v1572_v37, 0.0  ;;  %v1576_v57 = vpop.f32.mrb[27].mxu0  ;;  %v1727_v59 = vmax.f32 %v1613_v45, 0.0  ;;  %v1617_v61 = vpop.f32.mrb[27].mxu1  ;;  %v3668_v37 = vld [vmem:[#allocation9 + $0x114] ss:$8 sps:$4 sm:$0xff]  }
 0x1b7   :  { %v1726_v60 = vmax.f32 %v1574_v49, 0.0  ;;  %v1728_v1 = vmax.f32 %v1615_v55, 0.0  ;;  %v3669_v49 = vld [vmem:[#allocation9 + $0x120] ss:$8 sps:$4 sm:$0xff]  }
 0x1b8   :  { %v1745_v2 = vpack.c.bf16 %v1727_v59, %v1725_v43  ;;  %v3672_v59 = vld [vmem:[#allocation9 + $0x130] ss:$8 sps:$4 sm:$0xff]  }
 0x1b9   :  { %v1746_v4 = vpack.c.bf16 %v1728_v1, %v1726_v60  ;;  %v3677_v1 = vld [vmem:[#allocation9 + $0x144] ss:$8 sps:$4 sm:$0xff]  }
 0x1bb   :  { %2247 = vmatprep.mubr.bf16.mxu1 %v1746_v4 }
 0x1bc   :  { %2248 = vmatmul.mubr.bf16.gmra.mrb[56].mxu1 %v1745_v2 }
 0x1c3   :  { %v1653_v14 = vpop.f32.mrb[28].mxu0  ;;  %v1694_v16 = vpop.f32.mrb[28].mxu1 }
 0x1c4   :  { %v1654_v15 = vadd.f32 %v1653_v14, %v356_v5  ;;  %v1655_v17 = vpop.f32.mrb[29].mxu0  ;;  %v1695_v20 = vadd.f32 %v1694_v16, %v364_v8  ;;  %v1696_v21 = vpop.f32.mrb[29].mxu1  ;;  %v3678_v14 = vld [vmem:[#allocation9 + $0x150] ss:$8 sps:$4 sm:$0xff]  }
 0x1c5   :  { %v1656_v42 = vadd.f32 %v1655_v17, %v360_v9  ;;  %v1657_v22 = vpop.f32.mrb[30].mxu0  ;;  %v1697_v3 = vadd.f32 %v1696_v21, %v368_v13  ;;  %v1698_v24 = vpop.f32.mrb[30].mxu1  ;;  %v3675_v9 = vld [vmem:[#allocation9 + $0x140] ss:$8 sps:$4 sm:$0xff]   ;;  %v3680_v13 = vld [vmem:[#allocation9 + $0x154] ss:$8 sps:$4 sm:$0xff]  }
 0x1c6   :  { %v1729_v23 = vmax.f32 %v1654_v15, 0.0  ;;  %v1658_v26 = vpop.f32.mrb[31].mxu0  ;;  %v1731_v28 = vmax.f32 %v1695_v20, 0.0  ;;  %v1699_v30 = vpop.f32.mrb[31].mxu1  ;;  %v3683_v15 = vld [vmem:[#allocation9 + $0x164] ss:$8 sps:$4 sm:$0xff]  }
 0x1c7   :  { %v1730_v10 = vmax.f32 %v1656_v42, 0.0  ;;  %v1732_v11 = vmax.f32 %v1697_v3, 0.0  ;;  %v3681_v17 = vld [vmem:[#allocation9 + $0x160] ss:$8 sps:$4 sm:$0xff]   ;;  %v3686_v21 = vld [vmem:[#allocation9 + $0x174] ss:$8 sps:$4 sm:$0xff]  }
 0x1c8   :  { %v1747_v31 = vpack.c.bf16 %v1731_v28, %v1729_v23  ;;  %v3684_v28 = vld [vmem:[#allocation9 + $0x170] ss:$8 sps:$4 sm:$0xff]  }
 0x1c9   :  { %v1748_v0 = vpack.c.bf16 %v1732_v11, %v1730_v10  ;;  %v3689_v11 = vld [vmem:[#allocation9 + $0x184] ss:$8 sps:$4 sm:$0xff]  }
 0x1cb   :  { %2257 = vmatprep.mubr.bf16.mxu1 %v1748_v0 }
 0x1cc   :  { %2258 = vmatmul.mubr.bf16.gmra.mrb[60].mxu1 %v1747_v31 }
 0x1cd   :  { %2300 = vmatprep.mubr.bf16.mxu1 %v4045_v7 }
 0x1d4   :  { %2301 = vmatmul.mubr.bf16.vlgmr.msra.gmra.mrb[64].mxu1 %v4043_v6  ;;  %v4147_v6 = vld [vmem:[#allocation7] sm:$0xf] }
 0x1d5   :  { %2310 = vmatprep.mubr.bf16.mxu1 %v4063_v39  ;;  %v4151_v7 = vrot.slane %v4147_v6, %v4031_v44 }
 0x1dc   :  { %2311 = vmatmul.mubr.bf16.gmra.mrb[68].mxu1 %v4061_v38  ;;  %v4155_v38 = vrot.slane %v4147_v6, %v4035_v47 }
 0x1dd   :  { %2320 = vmatprep.mubr.bf16.mxu1 %v4079_v19 }
 0x1e4   :  { %2321 = vmatmul.mubr.bf16.gmra.mrb[72].mxu1 %v4077_v18 }
 0x1e5   :  { %2330 = vmatprep.mubr.bf16.mxu1 %v4093_v63 }
 0x1ec   :  { %2331 = vmatmul.mubr.bf16.gmra.mrb[76].mxu1 %v4091_v62 }
 0x1ed   :  { %2340 = vmatprep.mubr.bf16.mxu1 %v4109_v53 }
 0x1f4   :  { %2341 = vmatmul.mubr.bf16.gmra.mrb[80].mxu1 %v4107_v51 }
 0x1f5   :  { %2350 = vmatprep.mubr.bf16.mxu1 %v4123_v27 }
 0x1fc   :  { %2351 = vmatmul.mubr.bf16.gmra.mrb[84].mxu1 %v4121_v25 }
 0x1fd   :  { %2360 = vmatprep.mubr.bf16.mxu1 %v1746_v4 }
 0x204   :  { %2361 = vmatmul.mubr.bf16.gmra.mrb[88].mxu1 %v1745_v2 }
 0x205   :  { %2370 = vmatprep.mubr.bf16.mxu1 %v1748_v0 }
 0x20c   :  { %2371 = vmatmul.mubr.bf16.gmra.mrb[92].mxu1 %v1747_v31 }
 0x22f   :  { %v2189_v39 = vpop.f32.mrb[32].mxu1 }
 0x230   :  { %v2190_v18 = vadd.f32 %v2189_v39, %v4151_v7  ;;  %v2191_v19 = vpop.f32.mrb[33].mxu1 }
 0x231   :  { %v2192_v62 = vadd.f32 %v2191_v19, %v4155_v38  ;;  %v2193_v63 = vpop.f32.mrb[34].mxu1  ;;  %v3692_v19 = vld [vmem:[#allocation9 + $0x194] ss:$8 sps:$4 sm:$0xff]  }
 0x232   :  { %v2194_v51 = vadd.f32 %v2193_v63, %v4151_v7  ;;  %v2195_v53 = vpop.f32.mrb[35].mxu1  ;;  %v2381_v27 = vmax.f32 %v2190_v18, 0.0  ;;  %v3687_v18 = vld [vmem:[#allocation9 + $0x180] ss:$8 sps:$4 sm:$0xff]   ;;  %v3695_v63 = vld [vmem:[#allocation9 + $0x1a4] ss:$8 sps:$4 sm:$0xff]  }
 0x233   :  { %v2196_v25 = vadd.f32 %v2195_v53, %v4155_v38  ;;  %v2382_v32 = vmax.f32 %v2192_v62, 0.0  ;;  %v3690_v62 = vld [vmem:[#allocation9 + $0x190] ss:$8 sps:$4 sm:$0xff]   ;;  %v3693_v53 = vld [vmem:[#allocation9 + $0x1a0] ss:$8 sps:$4 sm:$0xff]  }
 0x234   :  { %v2385_v29 = vmax.f32 %v2194_v51, 0.0 }
 0x235   :  { %v2386_v33 = vmax.f32 %v2196_v25, 0.0 }
 0x236   :  { %v2445_v34 = vpack.c.bf16 %v2385_v29, %v2381_v27  ;;  %v3698_v29 = vld [vmem:[#allocation9 + $0x1b4] ss:$8 sps:$4 sm:$0xff]  }
 0x237   :  { %v2446_v35 = vpack.c.bf16 %v2386_v33, %v2382_v32 }
 0x239   :  { %2905 = vmatprep.mubr.bf16.mxu0 %v2446_v35 }
 0x23a   :  { %2906 = vmatmul.mubr.bf16.vlgmr.msra.gmra.mrb[32].mxu0 %v2445_v34 }
 0x23b   :  { %2987 = vmatpush1.bf16.msra.mxu0 %v3663_v36 }
 0x23c   :  { %2988 = vmatprep.subr.bf16.mxu0 %v3668_v37  ;;  %v3696_v37 = vld [vmem:[#allocation9 + $0x1b0] ss:$8 sps:$4 sm:$0xff]  }
 0x23f   :  { %v2199_v45 = vpop.f32.mrb[36].mxu1  ;;  %2989 = vmatpush1.bf16.msra.mxu0 %v3666_v40 }
 0x240   :  { %v2200_v50 = vadd.f32 %v2199_v45, %v4151_v7  ;;  %v2201_v52 = vpop.f32.mrb[37].mxu1  ;;  %2990 = vmatprep.subr.bf16.mxu0 %v3671_v41  ;;  %v3701_v45 = vld [vmem:[#allocation9 + $0x1c4] ss:$8 sps:$4 sm:$0xff]  }
 0x241   :  { %v2202_v43 = vadd.f32 %v2201_v52, %v4155_v38  ;;  %v2203_v55 = vpop.f32.mrb[38].mxu1 }
 0x242   :  { %v2204_v56 = vadd.f32 %v2203_v55, %v4151_v7  ;;  %v2205_v57 = vpop.f32.mrb[39].mxu1  ;;  %v2389_v60 = vmax.f32 %v2200_v50, 0.0  ;;  %v3704_v55 = vld [vmem:[#allocation9 + $0x1d4] ss:$8 sps:$4 sm:$0xff]  }
 0x243   :  { %v2206_v58 = vadd.f32 %v2205_v57, %v4155_v38  ;;  %2991 = vmatpush1.bf16.msra.mxu0 %v3669_v49  ;;  %v2390_v2 = vmax.f32 %v2202_v43, 0.0  ;;  %v3699_v43 = vld [vmem:[#allocation9 + $0x1c0] ss:$8 sps:$4 sm:$0xff]   ;;  %v3707_v57 = vld [vmem:[#allocation9 + $0x1e4] ss:$8 sps:$4 sm:$0xff]  }
 0x244   :  { %v2393_v61 = vmax.f32 %v2204_v56, 0.0  ;;  %2992 = vmatprep.subr.bf16.mxu0 %v3674_v54  ;;  %v3702_v56 = vld [vmem:[#allocation9 + $0x1d0] ss:$8 sps:$4 sm:$0xff]  }
 0x245   :  { %v2394_v4 = vmax.f32 %v2206_v58, 0.0 }
 0x246   :  { %v2449_v5 = vpack.c.bf16 %v2393_v61, %v2389_v60 }
 0x247   :  { %v2450_v8 = vpack.c.bf16 %v2394_v4, %v2390_v2  ;;  %2993 = vmatpush1.bf16.msra.mxu0 %v3672_v59  ;;  %v3705_v59 = vld [vmem:[#allocation9 + $0x1e0] ss:$8 sps:$4 sm:$0xff]  }
 0x248   :  { %2994 = vmatprep.subr.bf16.mxu0 %v3677_v1  ;;  %v3710_v1 = vld [vmem:[#allocation9 + $0x1f4] ss:$8 sps:$4 sm:$0xff]  }
 0x249   :  { %2915 = vmatprep.mubr.bf16.mxu0 %v2450_v8 }
 0x24a   :  { %2916 = vmatmul.mubr.bf16.gmra.mrb[36].mxu0 %v2449_v5 }
 0x24b   :  { %2995 = vmatpush1.bf16.msra.mxu0 %v3675_v9 }
 0x24c   :  { %2996 = vmatprep.subr.bf16.mxu0 %v3680_v13  ;;  %v3708_v13 = vld [vmem:[#allocation9 + $0x1f0] ss:$8 sps:$4 sm:$0xff]  }
 0x24f   :  { %v2209_v16 = vpop.f32.mrb[40].mxu1  ;;  %2997 = vmatpush1.bf16.msra.mxu0 %v3678_v14 }
 0x250   :  { %v2210_v20 = vadd.f32 %v2209_v16, %v4151_v7  ;;  %v2211_v42 = vpop.f32.mrb[41].mxu1  ;;  %2998 = vmatprep.subr.bf16.mxu0 %v3683_v15 }
 0x251   :  { %v2212_v22 = vadd.f32 %v2211_v42, %v4155_v38  ;;  %v2213_v23 = vpop.f32.mrb[42].mxu1 }
 0x252   :  { %v2214_v3 = vadd.f32 %v2213_v23, %v4151_v7  ;;  %v2215_v24 = vpop.f32.mrb[43].mxu1  ;;  %v2397_v10 = vmax.f32 %v2210_v20, 0.0 }
 0x253   :  { %v2216_v26 = vadd.f32 %v2215_v24, %v4155_v38  ;;  %2999 = vmatpush1.bf16.msra.mxu0 %v3681_v17  ;;  %v2398_v31 = vmax.f32 %v2212_v22, 0.0 }
 0x254   :  { %v2401_v30 = vmax.f32 %v2214_v3, 0.0  ;;  %3000 = vmatprep.subr.bf16.mxu0 %v3686_v21 }
 0x255   :  { %v2402_v0 = vmax.f32 %v2216_v26, 0.0 }
 0x256   :  { %v2453_v12 = vpack.c.bf16 %v2401_v30, %v2397_v10 }
 0x257   :  { %v2454_v39 = vpack.c.bf16 %v2402_v0, %v2398_v31  ;;  %3001 = vmatpush1.bf16.msra.mxu0 %v3684_v28 }
 0x258   :  { %3002 = vmatprep.subr.bf16.mxu0 %v3689_v11 }
 0x259   :  { %2925 = vmatprep.mubr.bf16.mxu0 %v2454_v39 }
 0x25a   :  { %2926 = vmatmul.mubr.bf16.gmra.mrb[40].mxu0 %v2453_v12 }
 0x25b   :  { %3003 = vmatpush1.bf16.msra.mxu0 %v3687_v18 }
 0x25c   :  { %3004 = vmatprep.subr.bf16.mxu0 %v3692_v19 }
 0x25f   :  { %v2219_v51 = vpop.f32.mrb[44].mxu1  ;;  %3005 = vmatpush1.bf16.msra.mxu0 %v3690_v62 }
 0x260   :  { %v2220_v25 = vadd.f32 %v2219_v51, %v4151_v7  ;;  %v2221_v27 = vpop.f32.mrb[45].mxu1  ;;  %3006 = vmatprep.subr.bf16.mxu0 %v3695_v63 }
 0x261   :  { %v2222_v32 = vadd.f32 %v2221_v27, %v4155_v38  ;;  %v2223_v33 = vpop.f32.mrb[46].mxu1 }
 0x262   :  { %v2224_v34 = vadd.f32 %v2223_v33, %v4151_v7  ;;  %v2225_v35 = vpop.f32.mrb[47].mxu1  ;;  %v2405_v40 = vmax.f32 %v2220_v25, 0.0 }
 0x263   :  { %v2226_v36 = vadd.f32 %v2225_v35, %v4155_v38  ;;  %3007 = vmatpush1.bf16.msra.mxu0 %v3693_v53  ;;  %v2406_v49 = vmax.f32 %v2222_v32, 0.0 }
 0x264   :  { %v2409_v41 = vmax.f32 %v2224_v34, 0.0  ;;  %3008 = vmatprep.subr.bf16.mxu0 %v3698_v29 }
 0x265   :  { %v2410_v50 = vmax.f32 %v2226_v36, 0.0 }
 0x266   :  { %v2457_v52 = vpack.c.bf16 %v2409_v41, %v2405_v40 }
 0x267   :  { %v2458_v54 = vpack.c.bf16 %v2410_v50, %v2406_v49  ;;  %3009 = vmatpush1.bf16.msra.mxu0 %v3696_v37 }
 0x268   :  { %3010 = vmatprep.subr.bf16.mxu0 %v3701_v45 }
 0x269   :  { %2935 = vmatprep.mubr.bf16.mxu0 %v2458_v54 }
 0x26a   :  { %2936 = vmatmul.mubr.bf16.gmra.mrb[44].mxu0 %v2457_v52 }
 0x26b   :  { %3011 = vmatpush1.bf16.msra.mxu0 %v3699_v43  ;;  %v4191_v43 = vrot.slane %v4147_v6, %v4033_v46 }
 0x26c   :  { %3012 = vmatprep.subr.bf16.mxu0 %v3704_v55 }
 0x26f   :  { %v2229_v58 = vpop.f32.mrb[48].mxu1  ;;  %3013 = vmatpush1.bf16.msra.mxu0 %v3702_v56 }
 0x270   :  { %v2230_v60 = vadd.f32 %v2229_v58, %v4151_v7  ;;  %v2231_v61 = vpop.f32.mrb[49].mxu1  ;;  %3014 = vmatprep.subr.bf16.mxu0 %v3707_v57  ;;  %v4195_v57 = vrot.slane %v4147_v6, %v4037_v48 }
 0x271   :  { %v2232_v2 = vadd.f32 %v2231_v61, %v4155_v38  ;;  %v2233_v4 = vpop.f32.mrb[50].mxu1 }
 0x272   :  { %v2234_v5 = vadd.f32 %v2233_v4, %v4151_v7  ;;  %v2235_v8 = vpop.f32.mrb[51].mxu1  ;;  %v2413_v14 = vmax.f32 %v2230_v60, 0.0 }
 0x273   :  { %v2236_v9 = vadd.f32 %v2235_v8, %v4155_v38  ;;  %3015 = vmatpush1.bf16.msra.mxu0 %v3705_v59  ;;  %v2414_v16 = vmax.f32 %v2232_v2, 0.0 }
 0x274   :  { %v2417_v15 = vmax.f32 %v2234_v5, 0.0  ;;  %3016 = vmatprep.subr.bf16.mxu0 %v3710_v1 }
 0x275   :  { %v2418_v17 = vmax.f32 %v2236_v9, 0.0 }
 0x276   :  { %v2461_v20 = vpack.c.bf16 %v2417_v15, %v2413_v14 }
 0x277   :  { %v2462_v42 = vpack.c.bf16 %v2418_v17, %v2414_v16  ;;  %3017 = vmatpush1.bf16.msra.mxu0 %v3708_v13 }
 0x279   :  { %2945 = vmatprep.mubr.bf16.mxu0 %v2462_v42 }
 0x27a   :  { %2946 = vmatmul.mubr.bf16.gmra.mrb[48].mxu0 %v2461_v20 }
 0x27f   :  { %v2239_v21 = vpop.f32.mrb[52].mxu1 }
 0x280   :  { %v2240_v22 = vadd.f32 %v2239_v21, %v4151_v7  ;;  %v2241_v23 = vpop.f32.mrb[53].mxu1 }
 0x281   :  { %v2242_v3 = vadd.f32 %v2241_v23, %v4155_v38  ;;  %v2243_v24 = vpop.f32.mrb[54].mxu1 }
 0x282   :  { %v2244_v26 = vadd.f32 %v2243_v24, %v4151_v7  ;;  %v2245_v28 = vpop.f32.mrb[55].mxu1  ;;  %v2421_v30 = vmax.f32 %v2240_v22, 0.0 }
 0x283   :  { %v2246_v10 = vadd.f32 %v2245_v28, %v4155_v38  ;;  %v2422_v31 = vmax.f32 %v2242_v3, 0.0 }
 0x284   :  { %v2425_v11 = vmax.f32 %v2244_v26, 0.0 }
 0x285   :  { %v2426_v0 = vmax.f32 %v2246_v10, 0.0 }
 0x286   :  { %v2465_v12 = vpack.c.bf16 %v2425_v11, %v2421_v30 }
 0x287   :  { %v2466_v39 = vpack.c.bf16 %v2426_v0, %v2422_v31 }
 0x289   :  { %2955 = vmatprep.mubr.bf16.mxu0 %v2466_v39 }
 0x28a   :  { %2956 = vmatmul.mubr.bf16.gmra.mrb[52].mxu0 %v2465_v12 }
 0x28f   :  { %v2249_v18 = vpop.f32.mrb[56].mxu1 }
 0x290   :  { %v2250_v19 = vadd.f32 %v2249_v18, %v4151_v7  ;;  %v2251_v62 = vpop.f32.mrb[57].mxu1 }
 0x291   :  { %v2252_v63 = vadd.f32 %v2251_v62, %v4155_v38  ;;  %v2253_v51 = vpop.f32.mrb[58].mxu1 }
 0x292   :  { %v2254_v53 = vadd.f32 %v2253_v51, %v4151_v7  ;;  %v2255_v25 = vpop.f32.mrb[59].mxu1  ;;  %v2429_v29 = vmax.f32 %v2250_v19, 0.0 }
 0x293   :  { %v2256_v27 = vadd.f32 %v2255_v25, %v4155_v38  ;;  %v2430_v33 = vmax.f32 %v2252_v63, 0.0 }
 0x294   :  { %v2433_v32 = vmax.f32 %v2254_v53, 0.0 }
 0x295   :  { %v2434_v34 = vmax.f32 %v2256_v27, 0.0 }
 0x296   :  { %v2469_v35 = vpack.c.bf16 %v2433_v32, %v2429_v29 }
 0x297   :  { %v2470_v36 = vpack.c.bf16 %v2434_v34, %v2430_v33 }
 0x299   :  { %2965 = vmatprep.mubr.bf16.mxu0 %v2470_v36 }
 0x29a   :  { %2966 = vmatmul.mubr.bf16.gmra.mrb[56].mxu0 %v2469_v35 }
 0x29f   :  { %v2259_v37 = vpop.f32.mrb[60].mxu1 }
 0x2a0   :  { %v2260_v40 = vadd.f32 %v2259_v37, %v4151_v7  ;;  %v2261_v41 = vpop.f32.mrb[61].mxu1 }
 0x2a1   :  { %v2262_v45 = vadd.f32 %v2261_v41, %v4155_v38  ;;  %v2263_v49 = vpop.f32.mrb[62].mxu1 }
 0x2a2   :  { %v2264_v50 = vadd.f32 %v2263_v49, %v4151_v7  ;;  %v2265_v52 = vpop.f32.mrb[63].mxu1  ;;  %v2437_v55 = vmax.f32 %v2260_v40, 0.0 }
 0x2a3   :  { %v2266_v54 = vadd.f32 %v2265_v52, %v4155_v38  ;;  %v2438_v58 = vmax.f32 %v2262_v45, 0.0 }
 0x2a4   :  { %v2441_v56 = vmax.f32 %v2264_v50, 0.0 }
 0x2a5   :  { %v2442_v59 = vmax.f32 %v2266_v54, 0.0 }
 0x2a6   :  { %v2473_v60 = vpack.c.bf16 %v2441_v56, %v2437_v55 }
 0x2a7   :  { %v2474_v61 = vpack.c.bf16 %v2442_v59, %v2438_v58  ;;  %v2302_v1 = vpop.f32.mrb[64].mxu1 }
 0x2a8   :  { %v2303_v7 = vadd.f32 %v2302_v1, %v4191_v43  ;;  %v2304_v2 = vpop.f32.mrb[65].mxu1 }
 0x2a9   :  { %v2305_v38 = vadd.f32 %v2304_v2, %v4195_v57  ;;  %v2306_v4 = vpop.f32.mrb[66].mxu1  ;;  %2975 = vmatprep.mubr.bf16.mxu0 %v2474_v61 }
 0x2aa   :  { %v2307_v46 = vadd.f32 %v2306_v4, %v4191_v43  ;;  %v2308_v5 = vpop.f32.mrb[67].mxu1  ;;  %2976 = vmatmul.mubr.bf16.gmra.mrb[60].mxu0 %v2473_v60  ;;  %v2383_v48 = vmax.f32 %v2303_v7, 0.0 }
 0x2ab   :  { %v2309_v8 = vadd.f32 %v2308_v5, %v4195_v57  ;;  %v2384_v9 = vmax.f32 %v2305_v38, 0.0 }
 0x2ac   :  { %v2387_v6 = vmax.f32 %v2307_v46, 0.0 }
 0x2ad   :  { %v2388_v13 = vmax.f32 %v2309_v8, 0.0 }
 0x2ae   :  { %v2447_v14 = vpack.c.bf16 %v2387_v6, %v2383_v48 }
 0x2af   :  { %v2448_v15 = vpack.c.bf16 %v2388_v13, %v2384_v9  ;;  %v2312_v16 = vpop.f32.mrb[68].mxu1 }
 0x2b0   :  { %v2313_v17 = vadd.f32 %v2312_v16, %v4191_v43  ;;  %v2314_v20 = vpop.f32.mrb[69].mxu1 }
 0x2b1   :  { %v2315_v42 = vadd.f32 %v2314_v20, %v4195_v57  ;;  %v2316_v21 = vpop.f32.mrb[70].mxu1  ;;  %3018 = vmatprep.mubr.bf16.mxu0 %v2448_v15 }
 0x2b2   :  { %v2317_v22 = vadd.f32 %v2316_v21, %v4191_v43  ;;  %v2318_v23 = vpop.f32.mrb[71].mxu1  ;;  %3019 = vmatmul.mubr.bf16.vlgmr.msra.gmra.mrb[32].mxu0 %v2447_v14  ;;  %v2391_v24 = vmax.f32 %v2313_v17, 0.0 }
 0x2b3   :  { %v2319_v3 = vadd.f32 %v2318_v23, %v4195_v57  ;;  %v2392_v28 = vmax.f32 %v2315_v42, 0.0 }
 0x2b4   :  { %v2395_v26 = vmax.f32 %v2317_v22, 0.0 }
 0x2b5   :  { %v2396_v10 = vmax.f32 %v2319_v3, 0.0 }
 0x2b6   :  { %v2451_v30 = vpack.c.bf16 %v2395_v26, %v2391_v24 }
 0x2b7   :  { %v2452_v11 = vpack.c.bf16 %v2396_v10, %v2392_v28  ;;  %v2322_v31 = vpop.f32.mrb[72].mxu1 }
 0x2b8   :  { %v2323_v0 = vadd.f32 %v2322_v31, %v4191_v43  ;;  %v2324_v12 = vpop.f32.mrb[73].mxu1 }
 0x2b9   :  { %v2325_v39 = vadd.f32 %v2324_v12, %v4195_v57  ;;  %v2326_v18 = vpop.f32.mrb[74].mxu1  ;;  %3028 = vmatprep.mubr.bf16.mxu0 %v2452_v11 }
 0x2ba   :  { %v2327_v19 = vadd.f32 %v2326_v18, %v4191_v43  ;;  %v2328_v62 = vpop.f32.mrb[75].mxu1  ;;  %3029 = vmatmul.mubr.bf16.gmra.mrb[36].mxu0 %v2451_v30  ;;  %v2399_v51 = vmax.f32 %v2323_v0, 0.0 }
 0x2bb   :  { %v2329_v63 = vadd.f32 %v2328_v62, %v4195_v57  ;;  %v2400_v25 = vmax.f32 %v2325_v39, 0.0 }
 0x2bc   :  { %v2403_v53 = vmax.f32 %v2327_v19, 0.0 }
 0x2bd   :  { %v2404_v27 = vmax.f32 %v2329_v63, 0.0 }
 0x2be   :  { %v2455_v29 = vpack.c.bf16 %v2403_v53, %v2399_v51 }
 0x2bf   :  { %v2456_v32 = vpack.c.bf16 %v2404_v27, %v2400_v25  ;;  %v2332_v33 = vpop.f32.mrb[76].mxu1 }
 0x2c0   :  { %v2333_v34 = vadd.f32 %v2332_v33, %v4191_v43  ;;  %v2334_v35 = vpop.f32.mrb[77].mxu1 }
 0x2c1   :  { %v2335_v36 = vadd.f32 %v2334_v35, %v4195_v57  ;;  %v2336_v37 = vpop.f32.mrb[78].mxu1  ;;  %3038 = vmatprep.mubr.bf16.mxu0 %v2456_v32 }
 0x2c2   :  { %v2337_v40 = vadd.f32 %v2336_v37, %v4191_v43  ;;  %v2338_v41 = vpop.f32.mrb[79].mxu1  ;;  %3039 = vmatmul.mubr.bf16.gmra.mrb[40].mxu0 %v2455_v29  ;;  %v2407_v49 = vmax.f32 %v2333_v34, 0.0 }
 0x2c3   :  { %v2339_v45 = vadd.f32 %v2338_v41, %v4195_v57  ;;  %v2408_v52 = vmax.f32 %v2335_v36, 0.0 }
 0x2c4   :  { %v2411_v50 = vmax.f32 %v2337_v40, 0.0 }
 0x2c5   :  { %v2412_v54 = vmax.f32 %v2339_v45, 0.0 }
 0x2c6   :  { %v2459_v55 = vpack.c.bf16 %v2411_v50, %v2407_v49 }
 0x2c7   :  { %v2460_v56 = vpack.c.bf16 %v2412_v54, %v2408_v52  ;;  %v2342_v58 = vpop.f32.mrb[80].mxu1  ;;  %v2541_v52 = vld [vmem:[#allocation10] sm:$0x3] }
 0x2c8   :  { %v2343_v59 = vadd.f32 %v2342_v58, %v4191_v43  ;;  %v2344_v60 = vpop.f32.mrb[81].mxu1  ;;  %v4230_v54 = vrot.slane %v2541_v52, %v4031_v44 }
 0x2c9   :  { %v2345_v61 = vadd.f32 %v2344_v60, %v4195_v57  ;;  %v2346_v1 = vpop.f32.mrb[82].mxu1  ;;  %3048 = vmatprep.mubr.bf16.mxu0 %v2460_v56 }
 0x2ca   :  { %v2347_v7 = vadd.f32 %v2346_v1, %v4191_v43  ;;  %v2348_v2 = vpop.f32.mrb[83].mxu1  ;;  %3049 = vmatmul.mubr.bf16.gmra.mrb[44].mxu0 %v2459_v55  ;;  %v2415_v4 = vmax.f32 %v2343_v59, 0.0  ;;  %v4233_v55 = vrot.slane %v2541_v52, %v4035_v47 }
 0x2cb   :  { %v2349_v38 = vadd.f32 %v2348_v2, %v4195_v57  ;;  %v2416_v5 = vmax.f32 %v2345_v61, 0.0 }
 0x2cc   :  { %v2419_v46 = vmax.f32 %v2347_v7, 0.0 }
 0x2cd   :  { %v2420_v8 = vmax.f32 %v2349_v38, 0.0 }
 0x2ce   :  { %v2463_v48 = vpack.c.bf16 %v2419_v46, %v2415_v4 }
 0x2cf   :  { %v2464_v6 = vpack.c.bf16 %v2420_v8, %v2416_v5  ;;  %v2352_v9 = vpop.f32.mrb[84].mxu1 }
 0x2d0   :  { %v2353_v13 = vadd.f32 %v2352_v9, %v4191_v43  ;;  %v2354_v14 = vpop.f32.mrb[85].mxu1 }
 0x2d1   :  { %v2355_v15 = vadd.f32 %v2354_v14, %v4195_v57  ;;  %v2356_v16 = vpop.f32.mrb[86].mxu1  ;;  %3058 = vmatprep.mubr.bf16.mxu0 %v2464_v6 }
 0x2d2   :  { %v2357_v17 = vadd.f32 %v2356_v16, %v4191_v43  ;;  %v2358_v20 = vpop.f32.mrb[87].mxu1  ;;  %3059 = vmatmul.mubr.bf16.gmra.mrb[48].mxu0 %v2463_v48  ;;  %v2423_v21 = vmax.f32 %v2353_v13, 0.0 }
 0x2d3   :  { %v2359_v42 = vadd.f32 %v2358_v20, %v4195_v57  ;;  %v2424_v23 = vmax.f32 %v2355_v15, 0.0 }
 0x2d4   :  { %v2427_v22 = vmax.f32 %v2357_v17, 0.0 }
 0x2d5   :  { %v2428_v3 = vmax.f32 %v2359_v42, 0.0 }
 0x2d6   :  { %v2467_v24 = vpack.c.bf16 %v2427_v22, %v2423_v21 }
 0x2d7   :  { %v2468_v26 = vpack.c.bf16 %v2428_v3, %v2424_v23  ;;  %v2362_v28 = vpop.f32.mrb[88].mxu1 }
 0x2d8   :  { %v2363_v10 = vadd.f32 %v2362_v28, %v4191_v43  ;;  %v2364_v30 = vpop.f32.mrb[89].mxu1 }
 0x2d9   :  { %v2365_v11 = vadd.f32 %v2364_v30, %v4195_v57  ;;  %v2366_v31 = vpop.f32.mrb[90].mxu1  ;;  %3068 = vmatprep.mubr.bf16.mxu0 %v2468_v26 }
 0x2da   :  { %v2367_v0 = vadd.f32 %v2366_v31, %v4191_v43  ;;  %v2368_v12 = vpop.f32.mrb[91].mxu1  ;;  %3069 = vmatmul.mubr.bf16.gmra.mrb[52].mxu0 %v2467_v24  ;;  %v2431_v18 = vmax.f32 %v2363_v10, 0.0 }
 0x2db   :  { %v2369_v39 = vadd.f32 %v2368_v12, %v4195_v57  ;;  %v2432_v62 = vmax.f32 %v2365_v11, 0.0 }
 0x2dc   :  { %v2435_v19 = vmax.f32 %v2367_v0, 0.0 }
 0x2dd   :  { %v2436_v63 = vmax.f32 %v2369_v39, 0.0 }
 0x2de   :  { %v2471_v51 = vpack.c.bf16 %v2435_v19, %v2431_v18 }
 0x2df   :  { %v2472_v53 = vpack.c.bf16 %v2436_v63, %v2432_v62  ;;  %v2372_v25 = vpop.f32.mrb[92].mxu1 }
 0x2e0   :  { %v2373_v27 = vadd.f32 %v2372_v25, %v4191_v43  ;;  %v2374_v29 = vpop.f32.mrb[93].mxu1 }
 0x2e1   :  { %v2375_v32 = vadd.f32 %v2374_v29, %v4195_v57  ;;  %v2376_v33 = vpop.f32.mrb[94].mxu1  ;;  %3078 = vmatprep.mubr.bf16.mxu0 %v2472_v53 }
 0x2e2   :  { %v2377_v34 = vadd.f32 %v2376_v33, %v4191_v43  ;;  %v2378_v35 = vpop.f32.mrb[95].mxu1  ;;  %3079 = vmatmul.mubr.bf16.gmra.mrb[56].mxu0 %v2471_v51  ;;  %v2439_v37 = vmax.f32 %v2373_v27, 0.0 }
 0x2e3   :  { %v2379_v36 = vadd.f32 %v2378_v35, %v4195_v57  ;;  %v2440_v41 = vmax.f32 %v2375_v32, 0.0 }
 0x2e4   :  { %v2443_v40 = vmax.f32 %v2377_v34, 0.0 }
 0x2e5   :  { %v2444_v45 = vmax.f32 %v2379_v36, 0.0 }
 0x2e6   :  { %v2475_v49 = vpack.c.bf16 %v2443_v40, %v2439_v37 }
 0x2e7   :  { %v2476_v50 = vpack.c.bf16 %v2444_v45, %v2440_v41 }
 0x2e9   :  { %3088 = vmatprep.mubr.bf16.mxu0 %v2476_v50 }
 0x2ea   :  { %3089 = vmatmul.mubr.bf16.gmra.mrb[60].mxu0 %v2475_v49 }
 0x385   :  { %v3020_v43 = vpop.f32.mrb[32].mxu0 }
 0x386   :  { %v3443_v56 = vadd.f32 %v3020_v43, %v4230_v54  ;;  %v3022_v58 = vpop.f32.mrb[33].mxu0 }
 0x387   :  { %v3444_v57 = vadd.f32 %v3022_v58, %v4233_v55  ;;  %v3024_v59 = vpop.f32.mrb[34].mxu0 }
 0x388   :  { %v3099_v60 = vmax.f32 %v3443_v56, 0.0  ;;  %v3445_v61 = vadd.f32 %v3024_v59, %v4230_v54  ;;  %v3026_v1 = vpop.f32.mrb[35].mxu0 }
 0x389   :  { %v3100_v7 = vmax.f32 %v3444_v57, 0.0  ;;  %v3446_v2 = vadd.f32 %v3026_v1, %v4233_v55 }
 0x38a   :  { %3131 = vst [vmem:[%s4370_s7] sm:$0xff] %v3099_v60  ;;  %v3101_v44 = vmax.f32 %v3445_v61, 0.0 }
 0x38b   :  { %3132 = vst [vmem:[%s4370_s7 + $0x8] sm:$0xff] %v3100_v7  ;;  %v3102_v47 = vmax.f32 %v3446_v2, 0.0 }
 0x38c   :  { %3133 = vst [vmem:[%s4370_s7 + $0x10] sm:$0xff] %v3101_v44 }
 0x38d   :  { %3134 = vst [vmem:[%s4370_s7 + $0x18] sm:$0xff] %v3102_v47  ;;  %v3030_v38 = vpop.f32.mrb[36].mxu0 }
 0x38e   :  { %v3447_v4 = vadd.f32 %v3030_v38, %v4230_v54  ;;  %v3032_v46 = vpop.f32.mrb[37].mxu0 }
 0x38f   :  { %v3448_v5 = vadd.f32 %v3032_v46, %v4233_v55  ;;  %v3034_v8 = vpop.f32.mrb[38].mxu0 }
 0x390   :  { %v3103_v48 = vmax.f32 %v3447_v4, 0.0  ;;  %v3449_v6 = vadd.f32 %v3034_v8, %v4230_v54  ;;  %v3036_v9 = vpop.f32.mrb[39].mxu0 }
 0x391   :  { %v3104_v13 = vmax.f32 %v3448_v5, 0.0  ;;  %v3450_v14 = vadd.f32 %v3036_v9, %v4233_v55 }
 0x392   :  { %3135 = vst [vmem:[%s4370_s7 + $0x20] sm:$0xff] %v3103_v48  ;;  %v3105_v15 = vmax.f32 %v3449_v6, 0.0 }
 0x393   :  { %3136 = vst [vmem:[%s4370_s7 + $0x28] sm:$0xff] %v3104_v13  ;;  %v3106_v16 = vmax.f32 %v3450_v14, 0.0 }
 0x394   :  { %3137 = vst [vmem:[%s4370_s7 + $0x30] sm:$0xff] %v3105_v15 }
 0x395   :  { %3138 = vst [vmem:[%s4370_s7 + $0x38] sm:$0xff] %v3106_v16  ;;  %v3040_v17 = vpop.f32.mrb[40].mxu0 }
 0x396   :  { %v3451_v20 = vadd.f32 %v3040_v17, %v4230_v54  ;;  %v3042_v42 = vpop.f32.mrb[41].mxu0 }
 0x397   :  { %v3452_v21 = vadd.f32 %v3042_v42, %v4233_v55  ;;  %v3044_v22 = vpop.f32.mrb[42].mxu0 }
 0x398   :  { %v3107_v23 = vmax.f32 %v3451_v20, 0.0  ;;  %v3453_v3 = vadd.f32 %v3044_v22, %v4230_v54  ;;  %v3046_v24 = vpop.f32.mrb[43].mxu0 }
 0x399   :  { %v3108_v26 = vmax.f32 %v3452_v21, 0.0  ;;  %v3454_v28 = vadd.f32 %v3046_v24, %v4233_v55 }
 0x39a   :  { %3139 = vst [vmem:[%s4370_s7 + $0x40] sm:$0xff] %v3107_v23  ;;  %v3109_v10 = vmax.f32 %v3453_v3, 0.0 }
 0x39b   :  { %3140 = vst [vmem:[%s4370_s7 + $0x48] sm:$0xff] %v3108_v26  ;;  %v3110_v30 = vmax.f32 %v3454_v28, 0.0 }
 0x39c   :  { %3141 = vst [vmem:[%s4370_s7 + $0x50] sm:$0xff] %v3109_v10 }
 0x39d   :  { %3142 = vst [vmem:[%s4370_s7 + $0x58] sm:$0xff] %v3110_v30  ;;  %v3050_v11 = vpop.f32.mrb[44].mxu0 }
 0x39e   :  { %v3455_v31 = vadd.f32 %v3050_v11, %v4230_v54  ;;  %v3052_v0 = vpop.f32.mrb[45].mxu0 }
 0x39f   :  { %v3456_v12 = vadd.f32 %v3052_v0, %v4233_v55  ;;  %v3054_v39 = vpop.f32.mrb[46].mxu0 }
 0x3a0   :  { %v3111_v18 = vmax.f32 %v3455_v31, 0.0  ;;  %v3457_v19 = vadd.f32 %v3054_v39, %v4230_v54  ;;  %v3056_v62 = vpop.f32.mrb[47].mxu0 }
 0x3a1   :  { %v3112_v63 = vmax.f32 %v3456_v12, 0.0  ;;  %v3458_v51 = vadd.f32 %v3056_v62, %v4233_v55 }
 0x3a2   :  { %3143 = vst [vmem:[%s4370_s7 + $0x60] sm:$0xff] %v3111_v18  ;;  %v3113_v53 = vmax.f32 %v3457_v19, 0.0 }
 0x3a3   :  { %3144 = vst [vmem:[%s4370_s7 + $0x68] sm:$0xff] %v3112_v63  ;;  %v3114_v25 = vmax.f32 %v3458_v51, 0.0 }
 0x3a4   :  { %3145 = vst [vmem:[%s4370_s7 + $0x70] sm:$0xff] %v3113_v53 }
 0x3a5   :  { %3146 = vst [vmem:[%s4370_s7 + $0x78] sm:$0xff] %v3114_v25  ;;  %v3060_v27 = vpop.f32.mrb[48].mxu0 }
 0x3a6   :  { %v3459_v29 = vadd.f32 %v3060_v27, %v4230_v54  ;;  %v3062_v32 = vpop.f32.mrb[49].mxu0 }
 0x3a7   :  { %v3460_v33 = vadd.f32 %v3062_v32, %v4233_v55  ;;  %v3064_v34 = vpop.f32.mrb[50].mxu0 }
 0x3a8   :  { %v3115_v35 = vmax.f32 %v3459_v29, 0.0  ;;  %v3461_v36 = vadd.f32 %v3064_v34, %v4230_v54  ;;  %v3066_v37 = vpop.f32.mrb[51].mxu0 }
 0x3a9   :  { %v3116_v40 = vmax.f32 %v3460_v33, 0.0  ;;  %v3462_v41 = vadd.f32 %v3066_v37, %v4233_v55 }
 0x3aa   :  { %3147 = vst [vmem:[%s4370_s7 + $0x80] sm:$0xff] %v3115_v35  ;;  %v3117_v45 = vmax.f32 %v3461_v36, 0.0 }
 0x3ab   :  { %3148 = vst [vmem:[%s4370_s7 + $0x88] sm:$0xff] %v3116_v40  ;;  %v3118_v49 = vmax.f32 %v3462_v41, 0.0 }
 0x3ac   :  { %3149 = vst [vmem:[%s4370_s7 + $0x90] sm:$0xff] %v3117_v45 }
 0x3ad   :  { %3150 = vst [vmem:[%s4370_s7 + $0x98] sm:$0xff] %v3118_v49  ;;  %v3070_v50 = vpop.f32.mrb[52].mxu0 }
 0x3ae   :  { %v3463_v52 = vadd.f32 %v3070_v50, %v4230_v54  ;;  %v3072_v43 = vpop.f32.mrb[53].mxu0 }
 0x3af   :  { %v3464_v56 = vadd.f32 %v3072_v43, %v4233_v55  ;;  %v3074_v58 = vpop.f32.mrb[54].mxu0 }
 0x3b0   :  { %v3119_v57 = vmax.f32 %v3463_v52, 0.0  ;;  %v3465_v59 = vadd.f32 %v3074_v58, %v4230_v54  ;;  %v3076_v60 = vpop.f32.mrb[55].mxu0 }
 0x3b1   :  { %v3120_v61 = vmax.f32 %v3464_v56, 0.0  ;;  %v3466_v1 = vadd.f32 %v3076_v60, %v4233_v55 }
 0x3b2   :  { %3151 = vst [vmem:[%s4370_s7 + $0xa0] sm:$0xff] %v3119_v57  ;;  %v3121_v7 = vmax.f32 %v3465_v59, 0.0 }
 0x3b3   :  { %3152 = vst [vmem:[%s4370_s7 + $0xa8] sm:$0xff] %v3120_v61  ;;  %v3122_v2 = vmax.f32 %v3466_v1, 0.0 }
 0x3b4   :  { %3153 = vst [vmem:[%s4370_s7 + $0xb0] sm:$0xff] %v3121_v7 }
 0x3b5   :  { %3154 = vst [vmem:[%s4370_s7 + $0xb8] sm:$0xff] %v3122_v2  ;;  %v3080_v44 = vpop.f32.mrb[56].mxu0 }
 0x3b6   :  { %v3467_v47 = vadd.f32 %v3080_v44, %v4230_v54  ;;  %v3082_v38 = vpop.f32.mrb[57].mxu0 }
 0x3b7   :  { %v3468_v4 = vadd.f32 %v3082_v38, %v4233_v55  ;;  %v3084_v46 = vpop.f32.mrb[58].mxu0 }
 0x3b8   :  { %v3123_v5 = vmax.f32 %v3467_v47, 0.0  ;;  %v3469_v8 = vadd.f32 %v3084_v46, %v4230_v54  ;;  %v3086_v48 = vpop.f32.mrb[59].mxu0 }
 0x3b9   :  { %v3124_v6 = vmax.f32 %v3468_v4, 0.0  ;;  %v3470_v9 = vadd.f32 %v3086_v48, %v4233_v55 }
 0x3ba   :  { %3155 = vst [vmem:[%s4370_s7 + $0xc0] sm:$0xff] %v3123_v5  ;;  %v3125_v13 = vmax.f32 %v3469_v8, 0.0 }
 0x3bb   :  { %3156 = vst [vmem:[%s4370_s7 + $0xc8] sm:$0xff] %v3124_v6  ;;  %v3126_v14 = vmax.f32 %v3470_v9, 0.0 }
 0x3bc   :  { %3157 = vst [vmem:[%s4370_s7 + $0xd0] sm:$0xff] %v3125_v13 }
 0x3bd   :  { %3158 = vst [vmem:[%s4370_s7 + $0xd8] sm:$0xff] %v3126_v14  ;;  %v3090_v15 = vpop.f32.mrb[60].mxu0 }
 0x3be   :  { %v3471_v16 = vadd.f32 %v3090_v15, %v4230_v54  ;;  %v3092_v17 = vpop.f32.mrb[61].mxu0 }
 0x3bf   :  { %v3472_v20 = vadd.f32 %v3092_v17, %v4233_v55  ;;  %v3094_v42 = vpop.f32.mrb[62].mxu0 }
 0x3c0   :  { %v3127_v21 = vmax.f32 %v3471_v16, 0.0  ;;  %v3473_v22 = vadd.f32 %v3094_v42, %v4230_v54  ;;  %v3096_v23 = vpop.f32.mrb[63].mxu0 }
 0x3c1   :  { %v3128_v3 = vmax.f32 %v3472_v20, 0.0  ;;  %v3474_v24 = vadd.f32 %v3096_v23, %v4233_v55 }
 0x3c2   :  { %3159 = vst [vmem:[%s4370_s7 + $0xe0] sm:$0xff] %v3127_v21  ;;  %v3129_v26 = vmax.f32 %v3473_v22, 0.0 }
 0x3c3   :  { %3160 = vst [vmem:[%s4370_s7 + $0xe8] sm:$0xff] %v3128_v3  ;;  %v3130_v28 = vmax.f32 %v3474_v24, 0.0 }
 0x3c4   :  { %3161 = vst [vmem:[%s4370_s7 + $0xf0] sm:$0xff] %v3129_v26 }
 0x3c5   :  { %3162 = vst [vmem:[%s4370_s7 + $0xf8] sm:$0xff] %v3130_v28 }
 0x3c6   :  { %3167 = vsyncpa [#allocation3], 1 }
 0x3c7   :  { %3168 = vsyncpa [#allocation5], 1 }
 0x3c8   :  { %3169 = vsyncpa [#allocation8], 1 }
 0x3c9   :  { %3170 = vsyncpa [#allocation11], 1 }

</bundles_post_ra>
